<compile_context>
chip_gen: v7x
topology: tpu7x:2x2x1
jax: 0.10.0
libtpu: 0.0.40
codegen_flags: <defaults>
</compile_context>

<pallas_src>
import functools

import jax
import jax.numpy as jnp
from jax.experimental import pallas as pl
from jax.experimental.pallas import tpu as pltpu

# ---- small, module-consistent sizes ----------------------------------------
B = 2            # batch (b_len)
S = 8            # seq_len
WL = 8           # word_len (chars per word)
E = 32           # emb_dim (char repr dim == word emb dim, in_dim = 2*E)
K = 3            # kernel_size
NUM_CNNS = 2     # num_cnns
NUM_LABELS = 5
CHAR_VOCAB = 20
WORD_VOCAB = 30
LANE = 128       # lane-dense padded width for the decoder output


# ---- in-kernel compute helpers (traced inside the fused Pallas kernel) -------
def _tap_masks(length, period, kernel_size):
  """Per-tap validity masks of shape (length, 1).

  Row r belongs to segment position (r % period); tap offset d is valid iff
  0 <= (r % period) + d < period, i.e. the conv never crosses word / batch
  boundaries (equivalent to zero 'same' padding of each segment).
  """
  pad = kernel_size // 2
  pos = jax.lax.broadcasted_iota(jnp.int32, (length, 1), 0) % period
  masks = []
  for k in range(kernel_size):
    d = k - pad
    masks.append(None if d == 0 else (pos + d >= 0) & (pos + d < period))
  return masks


def _conv_block(x, w_folded, b, masks, kernel_size):
  """Segment-masked 'same' conv as one matmul.

  x: (L, Cin); w_folded: (K*Cin, Cout) (tap-major); b: (Cout,).
  Shifted copies are built with pltpu.roll (circular) and boundary-masked, then
  concatenated along channels so all K taps fold into a single contraction.
  """
  pad = kernel_size // 2
  length = x.shape[0]
  taps = []
  for k in range(kernel_size):
    d = k - pad
    t = x if d == 0 else pltpu.roll(x, shift=(-d) % length, axis=0)
    if masks[k] is not None:
      t = jnp.where(masks[k], t, 0.0)
    taps.append(t)
  patches = jnp.concatenate(taps, axis=-1)                # (L, K*Cin)
  y = jnp.dot(patches, w_folded, preferred_element_type=jnp.float32)
  return y + b[None, :].astype(jnp.float32)


def _cnn_stack(x, ws, bs, masks, kernel_size, add_residual):
  """num_cnns residual conv blocks: x <- x + relu(conv(x))."""
  for l in range(ws.shape[0]):                            # static unroll
    y = jax.nn.relu(_conv_block(x, ws[l], bs[l], masks, kernel_size))
    x = (x + y) if add_residual else y
  return x


# ---- fused Pallas kernel -----------------------------------------------------
def _fused_forward_kernel(cemb_ref, wemb_ref,
                          cw_ref, cb_ref, ww_ref, wb_ref,
                          gw_ref, gb_ref, dw_ref, db_ref,
                          out_ref, *, word_len, seq_len, kernel_size,
                          add_residual):
  # ---- char encoder: one (B*S*WL, E) slab; words never mix (masks). ----------
  xc = cemb_ref[...].astype(jnp.float32)                  # (B*S*WL, E)
  char_masks = _tap_masks(xc.shape[0], word_len, kernel_size)
  xc = _cnn_stack(xc, cw_ref[...], cb_ref[...], char_masks, kernel_size,
                  add_residual)
  n_words = wemb_ref.shape[0]
  # max-pool over chars of each word: (B*S*WL, E) -> (B*S, WL, E) -> (B*S, E)
  char_feat = jnp.max(xc.reshape(n_words, word_len, xc.shape[-1]), axis=1)

  # ---- word encoder: one (B*S, E) slab; batch rows never mix (masks). --------
  xw = wemb_ref[...].astype(jnp.float32)                  # (B*S, E)
  seq_masks = _tap_masks(xw.shape[0], seq_len, kernel_size)
  xw = _cnn_stack(xw, ww_ref[...], wb_ref[...], seq_masks, kernel_size,
                  add_residual)

  # ---- combined encoder -> F.relu -> linear decoder (lane-dense output). -----
  x = jnp.concatenate([xw, char_feat], axis=-1)           # (B*S, 2E)
  x = _cnn_stack(x, gw_ref[...], gb_ref[...], seq_masks, kernel_size,
                 add_residual)
  x = jax.nn.relu(x)                                      # F.relu in forward()
  logits = jnp.dot(x, dw_ref[...], preferred_element_type=jnp.float32)
  out_ref[...] = logits + db_ref[...].astype(jnp.float32)  # (B*S, 128)


# ---- pallas_call wrapper -----------------------------------------------------
def _full_spec(shape):
  nd = len(shape)
  return pl.BlockSpec(shape, lambda i, _nd=nd: (0,) * _nd)


_CPARAMS = pltpu.CompilerParams(dimension_semantics=("arbitrary",))


def basic_paper_forward(params, w, c):
  b, s = w.shape
  wl = c.shape[-1]
  e = params["word_table"].shape[-1]
  nl = params["dec_w"].shape[-1]

  # Embedding lookups (gather) stay in plain-JAX glue; dropout_p = 0.0 -> no-op.
  # TODO(synk): could move the gathers in-kernel via scalar prefetch if vocabs grow.
  word_emb = jnp.take(params["word_table"], w, axis=0)            # (B, S, E)
  char_emb = jnp.take(params["char_table"], c, axis=0)            # (B, S, WL, E)

  # Lane-dense decoder weights: pad the NUM_LABELS dim to 128 with zeros.
  dw_pad = jnp.zeros((2 * e, LANE), jnp.float32).at[:, :nl].set(params["dec_w"])
  db_pad = jnp.zeros((1, LANE), jnp.float32).at[:, :nl].set(params["dec_b"])

  # Fold the K taps into the contraction dim of each conv weight.
  cw = params["char_cnn_w"]
  ww = params["word_cnn_w"]
  gw = params["comb_cnn_w"]
  args = (
      char_emb.reshape(b * s * wl, e),                       # (128, E)
      word_emb.reshape(b * s, e),                            # (16, E)
      cw.reshape(cw.shape[0], -1, cw.shape[-1]),             # (N, K*E, E)
      params["char_cnn_b"],                                  # (N, E)
      ww.reshape(ww.shape[0], -1, ww.shape[-1]),             # (N, K*E, E)
      params["word_cnn_b"],                                  # (N, E)
      gw.reshape(gw.shape[0], -1, gw.shape[-1]),             # (N, K*2E, 2E)
      params["comb_cnn_b"],                                  # (N, 2E)
      dw_pad,                                                # (2E, 128)
      db_pad,                                                # (1, 128)
  )

  kernel = functools.partial(_fused_forward_kernel, word_len=wl, seq_len=s,
                             kernel_size=K, add_residual=True)
  out = pl.pallas_call(
      kernel,
      out_shape=jax.ShapeDtypeStruct((b * s, LANE), jnp.float32),
      grid=(1,),
      in_specs=[_full_spec(a.shape) for a in args],
      out_specs=_full_spec((b * s, LANE)),
      compiler_params=_CPARAMS,
  )(*args)
  return out[:, :nl].reshape(b, s, nl)                        # (B, S, NUM_LABELS)


# ---- parameters (deterministic, in-script) ----------------------------------
def init_params(key):
  ks = jax.random.split(key, 10)
  sc = 0.1
  p = {}
  # nn.Embedding(padding_idx=0) -> zero the pad row.
  p["char_table"] = (sc * jax.random.normal(ks[0], (CHAR_VOCAB, E))).at[0].set(0.0)
  p["word_table"] = (sc * jax.random.normal(ks[1], (WORD_VOCAB, E))).at[0].set(0.0)
  # conv weights stored as (num_cnns, K, Cin, Cout); PyTorch layout would need a
  # transpose if real weights were ever loaded.
  p["char_cnn_w"] = sc * jax.random.normal(ks[2], (NUM_CNNS, K, E, E))
  p["char_cnn_b"] = sc * jax.random.normal(ks[3], (NUM_CNNS, E))
  p["word_cnn_w"] = sc * jax.random.normal(ks[4], (NUM_CNNS, K, E, E))
  p["word_cnn_b"] = sc * jax.random.normal(ks[5], (NUM_CNNS, E))
  p["comb_cnn_w"] = sc * jax.random.normal(ks[6], (NUM_CNNS, K, 2 * E, 2 * E))
  p["comb_cnn_b"] = sc * jax.random.normal(ks[7], (NUM_CNNS, 2 * E))
  p["dec_w"] = sc * jax.random.normal(ks[8], (2 * E, NUM_LABELS))
  p["dec_b"] = sc * jax.random.normal(ks[9], (1, NUM_LABELS))
  return p


if __name__ == "__main__":
  key = jax.random.PRNGKey(0)
  pkey, wkey, ckey = jax.random.split(key, 3)
  params = init_params(pkey)

  w = jax.random.randint(wkey, (B, S), 0, WORD_VOCAB, dtype=jnp.int32)
  c = jax.random.randint(ckey, (B, S, WL), 0, CHAR_VOCAB, dtype=jnp.int32)

  fwd = jax.jit(functools.partial(basic_paper_forward, params))
  out = jax.block_until_ready(fwd(w, c))

  assert out.shape == (B, S, NUM_LABELS), out.shape
  assert out.dtype == jnp.float32
  assert bool(jnp.all(jnp.isfinite(out)))
  print("KERNEL_OK")
</pallas_src>

<mosaic_0001>
module attributes {stable_mosaic.version = 11 : i64} {
  func.func @_fused_forward_kernel(%arg0: i32, %arg1: memref<128x32xf32, #tpu.memory_space<vmem>>, %arg2: memref<16x32xf32, #tpu.memory_space<vmem>>, %arg3: memref<2x96x32xf32, #tpu.memory_space<vmem>>, %arg4: memref<2x32xf32, #tpu.memory_space<vmem>>, %arg5: memref<2x96x32xf32, #tpu.memory_space<vmem>>, %arg6: memref<2x32xf32, #tpu.memory_space<vmem>>, %arg7: memref<2x192x64xf32, #tpu.memory_space<vmem>>, %arg8: memref<2x64xf32, #tpu.memory_space<vmem>>, %arg9: memref<64x128xf32, #tpu.memory_space<vmem>>, %arg10: memref<1x128xf32, #tpu.memory_space<vmem>>, %arg11: memref<16x128xf32, #tpu.memory_space<vmem>>) attributes {dimension_semantics = [#tpu.dimension_semantics<arbitrary>], iteration_bounds = array<i64: 1>, scalar_prefetch = 0 : i64, scratch_operands = 0 : i64, tpu.core_type = #tpu.core_type<tc>, window_params = [{pipeline_mode = #tpu.pipeline_mode<synchronous>, transform_indices = @transform_0, window_bounds = array<i64: 128, 32>}, {pipeline_mode = #tpu.pipeline_mode<synchronous>, transform_indices = @transform_1, window_bounds = array<i64: 16, 32>}, {pipeline_mode = #tpu.pipeline_mode<synchronous>, transform_indices = @transform_2, window_bounds = array<i64: 2, 96, 32>}, {pipeline_mode = #tpu.pipeline_mode<synchronous>, transform_indices = @transform_3, window_bounds = array<i64: 2, 32>}, {pipeline_mode = #tpu.pipeline_mode<synchronous>, transform_indices = @transform_4, window_bounds = array<i64: 2, 96, 32>}, {pipeline_mode = #tpu.pipeline_mode<synchronous>, transform_indices = @transform_5, window_bounds = array<i64: 2, 32>}, {pipeline_mode = #tpu.pipeline_mode<synchronous>, transform_indices = @transform_6, window_bounds = array<i64: 2, 192, 64>}, {pipeline_mode = #tpu.pipeline_mode<synchronous>, transform_indices = @transform_7, window_bounds = array<i64: 2, 64>}, {pipeline_mode = #tpu.pipeline_mode<synchronous>, transform_indices = @transform_8, window_bounds = array<i64: 64, 128>}, {pipeline_mode = #tpu.pipeline_mode<synchronous>, transform_indices = @transform_9, window_bounds = array<i64: 1, 128>}, {pipeline_mode = #tpu.pipeline_mode<synchronous>, transform_indices = @transform_10, window_bounds = array<i64: 16, 128>}]} {
    %c0 = arith.constant 0 : index
    %c0_0 = arith.constant 0 : index
    %0 = vector.load %arg1[%c0, %c0_0] : memref<128x32xf32, #tpu.memory_space<vmem>>, vector<128x32xf32>
    %1 = tpu.iota {dimensions = array<i32: 0>} : vector<128x1xi32>
    %c8_i32 = arith.constant 8 : i32
    %c0_i32 = arith.constant 0 : i32
    %2 = arith.cmpi eq, %c8_i32, %c0_i32 : i32
    %c1_i32 = arith.constant 1 : i32
    %3 = arith.select %2, %c1_i32, %c8_i32 : i32
    %4 = vector.broadcast %3 : i32 to vector<128x1xi32>
    %5 = arith.remsi %1, %4 : vector<128x1xi32>
    %c0_i32_1 = arith.constant 0 : i32
    %6 = vector.broadcast %c0_i32_1 : i32 to vector<128x1xi32>
    %7 = arith.cmpi ne, %5, %6 : vector<128x1xi32>
    %c0_i32_2 = arith.constant 0 : i32
    %8 = vector.broadcast %c0_i32_2 : i32 to vector<128x1xi32>
    %9 = arith.cmpi slt, %5, %8 : vector<128x1xi32>
    %c0_i32_3 = arith.constant 0 : i32
    %10 = arith.cmpi slt, %3, %c0_i32_3 : i32
    %11 = vector.broadcast %10 : i1 to vector<128x1xi1>
    %12 = vector.broadcast %11 : vector<128x1xi1> to vector<128x1xi1>
    %13 = arith.xori %9, %12 : vector<128x1xi1>
    %14 = arith.andi %13, %7 : vector<128x1xi1>
    %15 = vector.broadcast %3 : i32 to vector<128x1xi32>
    %16 = arith.addi %5, %15 : vector<128x1xi32>
    %17 = arith.select %14, %16, %5 : vector<128x1xi1>, vector<128x1xi32>
    %c-1_i32 = arith.constant -1 : i32
    %18 = vector.broadcast %c-1_i32 : i32 to vector<128x1xi32>
    %19 = arith.addi %17, %18 : vector<128x1xi32>
    %c0_i32_4 = arith.constant 0 : i32
    %20 = vector.broadcast %c0_i32_4 : i32 to vector<128x1xi32>
    %21 = arith.cmpi sge, %19, %20 : vector<128x1xi32>
    %c-1_i32_5 = arith.constant -1 : i32
    %22 = vector.broadcast %c-1_i32_5 : i32 to vector<128x1xi32>
    %23 = arith.addi %17, %22 : vector<128x1xi32>
    %c8_i32_6 = arith.constant 8 : i32
    %24 = vector.broadcast %c8_i32_6 : i32 to vector<128x1xi32>
    %25 = arith.cmpi slt, %23, %24 : vector<128x1xi32>
    %26 = arith.andi %21, %25 : vector<128x1xi1>
    %c1_i32_7 = arith.constant 1 : i32
    %27 = vector.broadcast %c1_i32_7 : i32 to vector<128x1xi32>
    %28 = arith.addi %17, %27 : vector<128x1xi32>
    %c0_i32_8 = arith.constant 0 : i32
    %29 = vector.broadcast %c0_i32_8 : i32 to vector<128x1xi32>
    %30 = arith.cmpi sge, %28, %29 : vector<128x1xi32>
    %c1_i32_9 = arith.constant 1 : i32
    %31 = vector.broadcast %c1_i32_9 : i32 to vector<128x1xi32>
    %32 = arith.addi %17, %31 : vector<128x1xi32>
    %c8_i32_10 = arith.constant 8 : i32
    %33 = vector.broadcast %c8_i32_10 : i32 to vector<128x1xi32>
    %34 = arith.cmpi slt, %32, %33 : vector<128x1xi32>
    %35 = arith.andi %30, %34 : vector<128x1xi1>
    %c0_11 = arith.constant 0 : index
    %c0_12 = arith.constant 0 : index
    %c0_13 = arith.constant 0 : index
    %36 = vector.load %arg3[%c0_11, %c0_12, %c0_13] : memref<2x96x32xf32, #tpu.memory_space<vmem>>, vector<2x96x32xf32>
    %c0_14 = arith.constant 0 : index
    %c0_15 = arith.constant 0 : index
    %37 = vector.load %arg4[%c0_14, %c0_15] : memref<2x32xf32, #tpu.memory_space<vmem>>, vector<2x32xf32>
    %38 = vector.extract_strided_slice %36 {offsets = [0, 0, 0], sizes = [1, 96, 32], strides = [1, 1, 1]} : vector<2x96x32xf32> to vector<1x96x32xf32>
    %39 = vector.shape_cast %38 : vector<1x96x32xf32> to vector<96x32xf32>
    %40 = vector.extract_strided_slice %37 {offsets = [0, 0], sizes = [1, 32], strides = [1, 1]} : vector<2x32xf32> to vector<1x32xf32>
    %41 = vector.shape_cast %40 : vector<1x32xf32> to vector<32xf32>
    %c1_i32_16 = arith.constant 1 : i32
    %42 = tpu.dynamic_rotate %0 by %c1_i32_16 dim 0 : vector<128x32xf32>, i32 -> vector<128x32xf32>
    %cst = arith.constant 0.000000e+00 : f32
    %43 = vector.shape_cast %26 : vector<128x1xi1> to vector<128x1xi1>
    %44 = vector.broadcast %43 : vector<128x1xi1> to vector<128x32xi1>
    %45 = vector.broadcast %cst : f32 to vector<128x32xf32>
    %46 = arith.select %44, %42, %45 : vector<128x32xi1>, vector<128x32xf32>
    %c127_i32 = arith.constant 127 : i32
    %47 = tpu.dynamic_rotate %0 by %c127_i32 dim 0 : vector<128x32xf32>, i32 -> vector<128x32xf32>
    %cst_17 = arith.constant 0.000000e+00 : f32
    %48 = vector.shape_cast %35 : vector<128x1xi1> to vector<128x1xi1>
    %49 = vector.broadcast %48 : vector<128x1xi1> to vector<128x32xi1>
    %50 = vector.broadcast %cst_17 : f32 to vector<128x32xf32>
    %51 = arith.select %49, %47, %50 : vector<128x32xi1>, vector<128x32xf32>
    %52 = tpu.concatenate %46, %0, %51 in 1 : vector<128x32xf32>, vector<128x32xf32>, vector<128x32xf32> -> vector<128x96xf32>
    %cst_18 = arith.constant dense<0.000000e+00> : vector<128x32xf32>
    %53 = tpu.matmul %52, %39, %cst_18 {dimension_numbers = #tpu.dot_dimension_numbers<[1], [0], [0], [1], [0, 0, 1, 1], [], []>} : vector<128x96xf32>, vector<96x32xf32>, vector<128x32xf32> -> vector<128x32xf32>
    %54 = vector.shape_cast %41 : vector<32xf32> to vector<1x32xf32>
    %55 = vector.broadcast %54 : vector<1x32xf32> to vector<128x32xf32>
    %56 = arith.addf %53, %55 : vector<128x32xf32>
    %cst_19 = arith.constant 0.000000e+00 : f32
    %57 = vector.broadcast %cst_19 : f32 to vector<128x32xf32>
    %58 = arith.maximumf %56, %57 : vector<128x32xf32>
    %59 = arith.addf %0, %58 : vector<128x32xf32>
    %60 = vector.extract_strided_slice %36 {offsets = [1, 0, 0], sizes = [1, 96, 32], strides = [1, 1, 1]} : vector<2x96x32xf32> to vector<1x96x32xf32>
    %61 = vector.shape_cast %60 : vector<1x96x32xf32> to vector<96x32xf32>
    %62 = vector.extract_strided_slice %37 {offsets = [1, 0], sizes = [1, 32], strides = [1, 1]} : vector<2x32xf32> to vector<1x32xf32>
    %63 = vector.shape_cast %62 : vector<1x32xf32> to vector<32xf32>
    %c1_i32_20 = arith.constant 1 : i32
    %64 = tpu.dynamic_rotate %59 by %c1_i32_20 dim 0 : vector<128x32xf32>, i32 -> vector<128x32xf32>
    %cst_21 = arith.constant 0.000000e+00 : f32
    %65 = vector.shape_cast %26 : vector<128x1xi1> to vector<128x1xi1>
    %66 = vector.broadcast %65 : vector<128x1xi1> to vector<128x32xi1>
    %67 = vector.broadcast %cst_21 : f32 to vector<128x32xf32>
    %68 = arith.select %66, %64, %67 : vector<128x32xi1>, vector<128x32xf32>
    %c127_i32_22 = arith.constant 127 : i32
    %69 = tpu.dynamic_rotate %59 by %c127_i32_22 dim 0 : vector<128x32xf32>, i32 -> vector<128x32xf32>
    %cst_23 = arith.constant 0.000000e+00 : f32
    %70 = vector.shape_cast %35 : vector<128x1xi1> to vector<128x1xi1>
    %71 = vector.broadcast %70 : vector<128x1xi1> to vector<128x32xi1>
    %72 = vector.broadcast %cst_23 : f32 to vector<128x32xf32>
    %73 = arith.select %71, %69, %72 : vector<128x32xi1>, vector<128x32xf32>
    %74 = tpu.concatenate %68, %59, %73 in 1 : vector<128x32xf32>, vector<128x32xf32>, vector<128x32xf32> -> vector<128x96xf32>
    %cst_24 = arith.constant dense<0.000000e+00> : vector<128x32xf32>
    %75 = tpu.matmul %74, %61, %cst_24 {dimension_numbers = #tpu.dot_dimension_numbers<[1], [0], [0], [1], [0, 0, 1, 1], [], []>} : vector<128x96xf32>, vector<96x32xf32>, vector<128x32xf32> -> vector<128x32xf32>
    %76 = vector.shape_cast %63 : vector<32xf32> to vector<1x32xf32>
    %77 = vector.broadcast %76 : vector<1x32xf32> to vector<128x32xf32>
    %78 = arith.addf %75, %77 : vector<128x32xf32>
    %cst_25 = arith.constant 0.000000e+00 : f32
    %79 = vector.broadcast %cst_25 : f32 to vector<128x32xf32>
    %80 = arith.maximumf %78, %79 : vector<128x32xf32>
    %81 = arith.addf %59, %80 : vector<128x32xf32>
    %82 = vector.shape_cast %81 : vector<128x32xf32> to vector<16x8x32xf32>
    %cst_26 = arith.constant dense<0xFF800000> : vector<16x32xf32>
    %83 = vector.multi_reduction <maximumf>, %82, %cst_26 [1] : vector<16x8x32xf32> to vector<16x32xf32>
    %c0_27 = arith.constant 0 : index
    %c0_28 = arith.constant 0 : index
    %84 = vector.load %arg2[%c0_27, %c0_28] : memref<16x32xf32, #tpu.memory_space<vmem>>, vector<16x32xf32>
    %85 = tpu.iota {dimensions = array<i32: 0>} : vector<16x1xi32>
    %c8_i32_29 = arith.constant 8 : i32
    %c0_i32_30 = arith.constant 0 : i32
    %86 = arith.cmpi eq, %c8_i32_29, %c0_i32_30 : i32
    %c1_i32_31 = arith.constant 1 : i32
    %87 = arith.select %86, %c1_i32_31, %c8_i32_29 : i32
    %88 = vector.broadcast %87 : i32 to vector<16x1xi32>
    %89 = arith.remsi %85, %88 : vector<16x1xi32>
    %c0_i32_32 = arith.constant 0 : i32
    %90 = vector.broadcast %c0_i32_32 : i32 to vector<16x1xi32>
    %91 = arith.cmpi ne, %89, %90 : vector<16x1xi32>
    %c0_i32_33 = arith.constant 0 : i32
    %92 = vector.broadcast %c0_i32_33 : i32 to vector<16x1xi32>
    %93 = arith.cmpi slt, %89, %92 : vector<16x1xi32>
    %c0_i32_34 = arith.constant 0 : i32
    %94 = arith.cmpi slt, %87, %c0_i32_34 : i32
    %95 = vector.broadcast %94 : i1 to vector<16x1xi1>
    %96 = vector.broadcast %95 : vector<16x1xi1> to vector<16x1xi1>
    %97 = arith.xori %93, %96 : vector<16x1xi1>
    %98 = arith.andi %97, %91 : vector<16x1xi1>
    %99 = vector.broadcast %87 : i32 to vector<16x1xi32>
    %100 = arith.addi %89, %99 : vector<16x1xi32>
    %101 = arith.select %98, %100, %89 : vector<16x1xi1>, vector<16x1xi32>
    %c-1_i32_35 = arith.constant -1 : i32
    %102 = vector.broadcast %c-1_i32_35 : i32 to vector<16x1xi32>
    %103 = arith.addi %101, %102 : vector<16x1xi32>
    %c0_i32_36 = arith.constant 0 : i32
    %104 = vector.broadcast %c0_i32_36 : i32 to vector<16x1xi32>
    %105 = arith.cmpi sge, %103, %104 : vector<16x1xi32>
    %c-1_i32_37 = arith.constant -1 : i32
    %106 = vector.broadcast %c-1_i32_37 : i32 to vector<16x1xi32>
    %107 = arith.addi %101, %106 : vector<16x1xi32>
    %c8_i32_38 = arith.constant 8 : i32
    %108 = vector.broadcast %c8_i32_38 : i32 to vector<16x1xi32>
    %109 = arith.cmpi slt, %107, %108 : vector<16x1xi32>
    %110 = arith.andi %105, %109 : vector<16x1xi1>
    %c1_i32_39 = arith.constant 1 : i32
    %111 = vector.broadcast %c1_i32_39 : i32 to vector<16x1xi32>
    %112 = arith.addi %101, %111 : vector<16x1xi32>
    %c0_i32_40 = arith.constant 0 : i32
    %113 = vector.broadcast %c0_i32_40 : i32 to vector<16x1xi32>
    %114 = arith.cmpi sge, %112, %113 : vector<16x1xi32>
    %c1_i32_41 = arith.constant 1 : i32
    %115 = vector.broadcast %c1_i32_41 : i32 to vector<16x1xi32>
    %116 = arith.addi %101, %115 : vector<16x1xi32>
    %c8_i32_42 = arith.constant 8 : i32
    %117 = vector.broadcast %c8_i32_42 : i32 to vector<16x1xi32>
    %118 = arith.cmpi slt, %116, %117 : vector<16x1xi32>
    %119 = arith.andi %114, %118 : vector<16x1xi1>
    %c0_43 = arith.constant 0 : index
    %c0_44 = arith.constant 0 : index
    %c0_45 = arith.constant 0 : index
    %120 = vector.load %arg5[%c0_43, %c0_44, %c0_45] : memref<2x96x32xf32, #tpu.memory_space<vmem>>, vector<2x96x32xf32>
    %c0_46 = arith.constant 0 : index
    %c0_47 = arith.constant 0 : index
    %121 = vector.load %arg6[%c0_46, %c0_47] : memref<2x32xf32, #tpu.memory_space<vmem>>, vector<2x32xf32>
    %122 = vector.extract_strided_slice %120 {offsets = [0, 0, 0], sizes = [1, 96, 32], strides = [1, 1, 1]} : vector<2x96x32xf32> to vector<1x96x32xf32>
    %123 = vector.shape_cast %122 : vector<1x96x32xf32> to vector<96x32xf32>
    %124 = vector.extract_strided_slice %121 {offsets = [0, 0], sizes = [1, 32], strides = [1, 1]} : vector<2x32xf32> to vector<1x32xf32>
    %125 = vector.shape_cast %124 : vector<1x32xf32> to vector<32xf32>
    %c1_i32_48 = arith.constant 1 : i32
    %126 = tpu.dynamic_rotate %84 by %c1_i32_48 dim 0 : vector<16x32xf32>, i32 -> vector<16x32xf32>
    %cst_49 = arith.constant 0.000000e+00 : f32
    %127 = vector.shape_cast %110 : vector<16x1xi1> to vector<16x1xi1>
    %128 = vector.broadcast %127 : vector<16x1xi1> to vector<16x32xi1>
    %129 = vector.broadcast %cst_49 : f32 to vector<16x32xf32>
    %130 = arith.select %128, %126, %129 : vector<16x32xi1>, vector<16x32xf32>
    %c15_i32 = arith.constant 15 : i32
    %131 = tpu.dynamic_rotate %84 by %c15_i32 dim 0 : vector<16x32xf32>, i32 -> vector<16x32xf32>
    %cst_50 = arith.constant 0.000000e+00 : f32
    %132 = vector.shape_cast %119 : vector<16x1xi1> to vector<16x1xi1>
    %133 = vector.broadcast %132 : vector<16x1xi1> to vector<16x32xi1>
    %134 = vector.broadcast %cst_50 : f32 to vector<16x32xf32>
    %135 = arith.select %133, %131, %134 : vector<16x32xi1>, vector<16x32xf32>
    %136 = tpu.concatenate %130, %84, %135 in 1 : vector<16x32xf32>, vector<16x32xf32>, vector<16x32xf32> -> vector<16x96xf32>
    %cst_51 = arith.constant dense<0.000000e+00> : vector<16x32xf32>
    %137 = tpu.matmul %136, %123, %cst_51 {dimension_numbers = #tpu.dot_dimension_numbers<[1], [0], [0], [1], [0, 0, 1, 1], [], []>} : vector<16x96xf32>, vector<96x32xf32>, vector<16x32xf32> -> vector<16x32xf32>
    %138 = vector.shape_cast %125 : vector<32xf32> to vector<1x32xf32>
    %139 = vector.broadcast %138 : vector<1x32xf32> to vector<16x32xf32>
    %140 = arith.addf %137, %139 : vector<16x32xf32>
    %cst_52 = arith.constant 0.000000e+00 : f32
    %141 = vector.broadcast %cst_52 : f32 to vector<16x32xf32>
    %142 = arith.maximumf %140, %141 : vector<16x32xf32>
    %143 = arith.addf %84, %142 : vector<16x32xf32>
    %144 = vector.extract_strided_slice %120 {offsets = [1, 0, 0], sizes = [1, 96, 32], strides = [1, 1, 1]} : vector<2x96x32xf32> to vector<1x96x32xf32>
    %145 = vector.shape_cast %144 : vector<1x96x32xf32> to vector<96x32xf32>
    %146 = vector.extract_strided_slice %121 {offsets = [1, 0], sizes = [1, 32], strides = [1, 1]} : vector<2x32xf32> to vector<1x32xf32>
    %147 = vector.shape_cast %146 : vector<1x32xf32> to vector<32xf32>
    %c1_i32_53 = arith.constant 1 : i32
    %148 = tpu.dynamic_rotate %143 by %c1_i32_53 dim 0 : vector<16x32xf32>, i32 -> vector<16x32xf32>
    %cst_54 = arith.constant 0.000000e+00 : f32
    %149 = vector.shape_cast %110 : vector<16x1xi1> to vector<16x1xi1>
    %150 = vector.broadcast %149 : vector<16x1xi1> to vector<16x32xi1>
    %151 = vector.broadcast %cst_54 : f32 to vector<16x32xf32>
    %152 = arith.select %150, %148, %151 : vector<16x32xi1>, vector<16x32xf32>
    %c15_i32_55 = arith.constant 15 : i32
    %153 = tpu.dynamic_rotate %143 by %c15_i32_55 dim 0 : vector<16x32xf32>, i32 -> vector<16x32xf32>
    %cst_56 = arith.constant 0.000000e+00 : f32
    %154 = vector.shape_cast %119 : vector<16x1xi1> to vector<16x1xi1>
    %155 = vector.broadcast %154 : vector<16x1xi1> to vector<16x32xi1>
    %156 = vector.broadcast %cst_56 : f32 to vector<16x32xf32>
    %157 = arith.select %155, %153, %156 : vector<16x32xi1>, vector<16x32xf32>
    %158 = tpu.concatenate %152, %143, %157 in 1 : vector<16x32xf32>, vector<16x32xf32>, vector<16x32xf32> -> vector<16x96xf32>
    %cst_57 = arith.constant dense<0.000000e+00> : vector<16x32xf32>
    %159 = tpu.matmul %158, %145, %cst_57 {dimension_numbers = #tpu.dot_dimension_numbers<[1], [0], [0], [1], [0, 0, 1, 1], [], []>} : vector<16x96xf32>, vector<96x32xf32>, vector<16x32xf32> -> vector<16x32xf32>
    %160 = vector.shape_cast %147 : vector<32xf32> to vector<1x32xf32>
    %161 = vector.broadcast %160 : vector<1x32xf32> to vector<16x32xf32>
    %162 = arith.addf %159, %161 : vector<16x32xf32>
    %cst_58 = arith.constant 0.000000e+00 : f32
    %163 = vector.broadcast %cst_58 : f32 to vector<16x32xf32>
    %164 = arith.maximumf %162, %163 : vector<16x32xf32>
    %165 = arith.addf %143, %164 : vector<16x32xf32>
    %166 = tpu.concatenate %165, %83 in 1 : vector<16x32xf32>, vector<16x32xf32> -> vector<16x64xf32>
    %c0_59 = arith.constant 0 : index
    %c0_60 = arith.constant 0 : index
    %c0_61 = arith.constant 0 : index
    %167 = vector.load %arg7[%c0_59, %c0_60, %c0_61] : memref<2x192x64xf32, #tpu.memory_space<vmem>>, vector<2x192x64xf32>
    %c0_62 = arith.constant 0 : index
    %c0_63 = arith.constant 0 : index
    %168 = vector.load %arg8[%c0_62, %c0_63] : memref<2x64xf32, #tpu.memory_space<vmem>>, vector<2x64xf32>
    %169 = vector.extract_strided_slice %167 {offsets = [0, 0, 0], sizes = [1, 192, 64], strides = [1, 1, 1]} : vector<2x192x64xf32> to vector<1x192x64xf32>
    %170 = vector.shape_cast %169 : vector<1x192x64xf32> to vector<192x64xf32>
    %171 = vector.extract_strided_slice %168 {offsets = [0, 0], sizes = [1, 64], strides = [1, 1]} : vector<2x64xf32> to vector<1x64xf32>
    %172 = vector.shape_cast %171 : vector<1x64xf32> to vector<64xf32>
    %c1_i32_64 = arith.constant 1 : i32
    %173 = tpu.dynamic_rotate %166 by %c1_i32_64 dim 0 : vector<16x64xf32>, i32 -> vector<16x64xf32>
    %cst_65 = arith.constant 0.000000e+00 : f32
    %174 = vector.shape_cast %110 : vector<16x1xi1> to vector<16x1xi1>
    %175 = vector.broadcast %174 : vector<16x1xi1> to vector<16x64xi1>
    %176 = vector.broadcast %cst_65 : f32 to vector<16x64xf32>
    %177 = arith.select %175, %173, %176 : vector<16x64xi1>, vector<16x64xf32>
    %c15_i32_66 = arith.constant 15 : i32
    %178 = tpu.dynamic_rotate %166 by %c15_i32_66 dim 0 : vector<16x64xf32>, i32 -> vector<16x64xf32>
    %cst_67 = arith.constant 0.000000e+00 : f32
    %179 = vector.shape_cast %119 : vector<16x1xi1> to vector<16x1xi1>
    %180 = vector.broadcast %179 : vector<16x1xi1> to vector<16x64xi1>
    %181 = vector.broadcast %cst_67 : f32 to vector<16x64xf32>
    %182 = arith.select %180, %178, %181 : vector<16x64xi1>, vector<16x64xf32>
    %183 = tpu.concatenate %177, %166, %182 in 1 : vector<16x64xf32>, vector<16x64xf32>, vector<16x64xf32> -> vector<16x192xf32>
    %cst_68 = arith.constant dense<0.000000e+00> : vector<16x64xf32>
    %184 = tpu.matmul %183, %170, %cst_68 {dimension_numbers = #tpu.dot_dimension_numbers<[1], [0], [0], [1], [0, 0, 1, 1], [], []>} : vector<16x192xf32>, vector<192x64xf32>, vector<16x64xf32> -> vector<16x64xf32>
    %185 = vector.shape_cast %172 : vector<64xf32> to vector<1x64xf32>
    %186 = vector.broadcast %185 : vector<1x64xf32> to vector<16x64xf32>
    %187 = arith.addf %184, %186 : vector<16x64xf32>
    %cst_69 = arith.constant 0.000000e+00 : f32
    %188 = vector.broadcast %cst_69 : f32 to vector<16x64xf32>
    %189 = arith.maximumf %187, %188 : vector<16x64xf32>
    %190 = arith.addf %166, %189 : vector<16x64xf32>
    %191 = vector.extract_strided_slice %167 {offsets = [1, 0, 0], sizes = [1, 192, 64], strides = [1, 1, 1]} : vector<2x192x64xf32> to vector<1x192x64xf32>
    %192 = vector.shape_cast %191 : vector<1x192x64xf32> to vector<192x64xf32>
    %193 = vector.extract_strided_slice %168 {offsets = [1, 0], sizes = [1, 64], strides = [1, 1]} : vector<2x64xf32> to vector<1x64xf32>
    %194 = vector.shape_cast %193 : vector<1x64xf32> to vector<64xf32>
    %c1_i32_70 = arith.constant 1 : i32
    %195 = tpu.dynamic_rotate %190 by %c1_i32_70 dim 0 : vector<16x64xf32>, i32 -> vector<16x64xf32>
    %cst_71 = arith.constant 0.000000e+00 : f32
    %196 = vector.shape_cast %110 : vector<16x1xi1> to vector<16x1xi1>
    %197 = vector.broadcast %196 : vector<16x1xi1> to vector<16x64xi1>
    %198 = vector.broadcast %cst_71 : f32 to vector<16x64xf32>
    %199 = arith.select %197, %195, %198 : vector<16x64xi1>, vector<16x64xf32>
    %c15_i32_72 = arith.constant 15 : i32
    %200 = tpu.dynamic_rotate %190 by %c15_i32_72 dim 0 : vector<16x64xf32>, i32 -> vector<16x64xf32>
    %cst_73 = arith.constant 0.000000e+00 : f32
    %201 = vector.shape_cast %119 : vector<16x1xi1> to vector<16x1xi1>
    %202 = vector.broadcast %201 : vector<16x1xi1> to vector<16x64xi1>
    %203 = vector.broadcast %cst_73 : f32 to vector<16x64xf32>
    %204 = arith.select %202, %200, %203 : vector<16x64xi1>, vector<16x64xf32>
    %205 = tpu.concatenate %199, %190, %204 in 1 : vector<16x64xf32>, vector<16x64xf32>, vector<16x64xf32> -> vector<16x192xf32>
    %cst_74 = arith.constant dense<0.000000e+00> : vector<16x64xf32>
    %206 = tpu.matmul %205, %192, %cst_74 {dimension_numbers = #tpu.dot_dimension_numbers<[1], [0], [0], [1], [0, 0, 1, 1], [], []>} : vector<16x192xf32>, vector<192x64xf32>, vector<16x64xf32> -> vector<16x64xf32>
    %207 = vector.shape_cast %194 : vector<64xf32> to vector<1x64xf32>
    %208 = vector.broadcast %207 : vector<1x64xf32> to vector<16x64xf32>
    %209 = arith.addf %206, %208 : vector<16x64xf32>
    %cst_75 = arith.constant 0.000000e+00 : f32
    %210 = vector.broadcast %cst_75 : f32 to vector<16x64xf32>
    %211 = arith.maximumf %209, %210 : vector<16x64xf32>
    %212 = arith.addf %190, %211 : vector<16x64xf32>
    %cst_76 = arith.constant 0.000000e+00 : f32
    %213 = vector.broadcast %cst_76 : f32 to vector<16x64xf32>
    %214 = arith.maximumf %212, %213 : vector<16x64xf32>
    %c0_77 = arith.constant 0 : index
    %c0_78 = arith.constant 0 : index
    %215 = vector.load %arg9[%c0_77, %c0_78] : memref<64x128xf32, #tpu.memory_space<vmem>>, vector<64x128xf32>
    %cst_79 = arith.constant dense<0.000000e+00> : vector<16x128xf32>
    %216 = tpu.matmul %214, %215, %cst_79 {dimension_numbers = #tpu.dot_dimension_numbers<[1], [0], [0], [1], [0, 0, 1, 1], [], []>} : vector<16x64xf32>, vector<64x128xf32>, vector<16x128xf32> -> vector<16x128xf32>
    %c0_80 = arith.constant 0 : index
    %c0_81 = arith.constant 0 : index
    %217 = vector.load %arg10[%c0_80, %c0_81] : memref<1x128xf32, #tpu.memory_space<vmem>>, vector<1x128xf32>
    %218 = vector.broadcast %217 : vector<1x128xf32> to vector<16x128xf32>
    %219 = arith.addf %216, %218 : vector<16x128xf32>
    %c0_82 = arith.constant 0 : index
    %c0_83 = arith.constant 0 : index
    %220 = vector.load %arg11[%c0_82, %c0_83] : memref<16x128xf32, #tpu.memory_space<vmem>>, vector<16x128xf32>
    tpu.vector_store %arg11[%c0_82, %c0_83], %219 {strides = array<i32>} : memref<16x128xf32, #tpu.memory_space<vmem>>, vector<16x128xf32>,
    return
  }
  func.func @transform_0(%arg0: i32) -> (i32, i32) {
    %c0_i32 = arith.constant 0 : i32
    %c0_i32_0 = arith.constant 0 : i32
    %c0_i32_1 = arith.constant 0 : i32
    return %c0_i32, %c0_i32_0 : i32, i32
  }
  func.func @transform_1(%arg0: i32) -> (i32, i32) {
    %c0_i32 = arith.constant 0 : i32
    %c0_i32_0 = arith.constant 0 : i32
    %c0_i32_1 = arith.constant 0 : i32
    return %c0_i32, %c0_i32_0 : i32, i32
  }
  func.func @transform_2(%arg0: i32) -> (i32, i32, i32) {
    %c0_i32 = arith.constant 0 : i32
    %c0_i32_0 = arith.constant 0 : i32
    %c0_i32_1 = arith.constant 0 : i32
    %c0_i32_2 = arith.constant 0 : i32
    return %c0_i32, %c0_i32_0, %c0_i32_1 : i32, i32, i32
  }
  func.func @transform_3(%arg0: i32) -> (i32, i32) {
    %c0_i32 = arith.constant 0 : i32
    %c0_i32_0 = arith.constant 0 : i32
    %c0_i32_1 = arith.constant 0 : i32
    return %c0_i32, %c0_i32_0 : i32, i32
  }
  func.func @transform_4(%arg0: i32) -> (i32, i32, i32) {
    %c0_i32 = arith.constant 0 : i32
    %c0_i32_0 = arith.constant 0 : i32
    %c0_i32_1 = arith.constant 0 : i32
    %c0_i32_2 = arith.constant 0 : i32
    return %c0_i32, %c0_i32_0, %c0_i32_1 : i32, i32, i32
  }
  func.func @transform_5(%arg0: i32) -> (i32, i32) {
    %c0_i32 = arith.constant 0 : i32
    %c0_i32_0 = arith.constant 0 : i32
    %c0_i32_1 = arith.constant 0 : i32
    return %c0_i32, %c0_i32_0 : i32, i32
  }
  func.func @transform_6(%arg0: i32) -> (i32, i32, i32) {
    %c0_i32 = arith.constant 0 : i32
    %c0_i32_0 = arith.constant 0 : i32
    %c0_i32_1 = arith.constant 0 : i32
    %c0_i32_2 = arith.constant 0 : i32
    return %c0_i32, %c0_i32_0, %c0_i32_1 : i32, i32, i32
  }
  func.func @transform_7(%arg0: i32) -> (i32, i32) {
    %c0_i32 = arith.constant 0 : i32
    %c0_i32_0 = arith.constant 0 : i32
    %c0_i32_1 = arith.constant 0 : i32
    return %c0_i32, %c0_i32_0 : i32, i32
  }
  func.func @transform_8(%arg0: i32) -> (i32, i32) {
    %c0_i32 = arith.constant 0 : i32
    %c0_i32_0 = arith.constant 0 : i32
    %c0_i32_1 = arith.constant 0 : i32
    return %c0_i32, %c0_i32_0 : i32, i32
  }
  func.func @transform_9(%arg0: i32) -> (i32, i32) {
    %c0_i32 = arith.constant 0 : i32
    %c0_i32_0 = arith.constant 0 : i32
    %c0_i32_1 = arith.constant 0 : i32
    return %c0_i32, %c0_i32_0 : i32, i32
  }
  func.func @transform_10(%arg0: i32) -> (i32, i32) {
    %c0_i32 = arith.constant 0 : i32
    %c0_i32_0 = arith.constant 0 : i32
    %c0_i32_1 = arith.constant 0 : i32
    return %c0_i32, %c0_i32_0 : i32, i32
  }
}

</mosaic_0001>

<bundles_post_ra>
// kernel: basic_paper_forward.1
= control target key start
LH: loop header
LB: loop body
LE: loop exit
PB: predicated region body
PF: predicated region fallthrough
CT: control target
= control target key end

     0   :  { %v51_v0 = vlaneseq  ;;  %s2746_s19 = smov 32   ;;  %s2747_s26 = smov 64   ;;  %s4299_s0 = inlined_call_operand.vmem [shape: f32[128,32], index: 0, kind: input, shape index: {}]   ;;  %s4300_s2 = inlined_call_operand.vmem [shape: f32[2,96,32], index: 2, kind: input, shape index: {}]   ;;  %s4301_s4 = inlined_call_operand.vmem [shape: f32[2,96,32], index: 4, kind: input, shape index: {}]   ;;  %s4302_s1 = inlined_call_operand.vmem [shape: f32[16,32], index: 1, kind: input, shape index: {}]   ;;  %s4303_s3 = inlined_call_operand.vmem [shape: f32[2,32], index: 3, kind: input, shape index: {}]   ;;  %s4304_s5 = inlined_call_operand.vmem [shape: f32[2,32], index: 5, kind: input, shape index: {}]   ;;  %s4305_s6 = inlined_call_operand.vmem [shape: f32[2,192,64], index: 6, kind: input, shape index: {}]   ;;  %s4306_s7 = inlined_call_operand.vmem [shape: f32[2,64], index: 7, kind: input, shape index: {}]   ;;  %s4307_s8 = inlined_call_operand.vmem [shape: f32[64,128], index: 8, kind: input, shape index: {}]   ;;  %s4308_s9 = inlined_call_operand.vmem [shape: f32[1,128], index: 9, kind: input, shape index: {}]   ;;  %s4309_s10 = inlined_call_operand.vmem [shape: f32[16,128], index: 10, kind: output, shape index: {}]  }
   0x1   :  { %v2807_v1 = vld [vmem:[%s4299_s0] sm:$0xff]  ;;  %v2812_v2 = vld [vmem:[%s4299_s0 + $0x18] sm:$0xff]  ;;  %v2817_v3 = vld [vmem:[%s4299_s0 + $0x8] sm:$0xff] }
   0x2   :  { %591 = vrot.lane.b32.xlu0 %v2807_v1, %s2746_s19  ;;  %597 = vrot.lane.b32.xlu1 %v2812_v2, %s2746_s19  ;;  %v2826_v4 = vld [vmem:[%s4299_s0 + $0x10] sm:$0xff]  ;;  %v2828_v5 = vshrl.u32 %v51_v0, 7  ;;  %v494_v6 = vrot.slane %v2807_v1, 1  ;;  %v495_v7 = vrot.slane %v2817_v3, 1  ;;  %v497_v11 = vrot.slane %v2812_v2, 1  ;;  %v2842_v12 = vld [vmem:[%s4299_s0 + $0x20] sm:$0xff] }
   0x3   :  { %v496_v8 = vrot.slane %v2826_v4, 1  ;;  %v498_v19 = vrot.slane %v2842_v12, 1  ;;  %v2866_v20 = vld [vmem:[%s4299_s0 + $0x28] sm:$0xff]  ;;  %v2915_v36 = vld [vmem:[%s4299_s0 + $0x30] sm:$0xff]  ;;  %v2936_v43 = vld [vmem:[%s4299_s0 + $0x38] sm:$0xff] }
   0x4   :  { %v72_v9 = vand.u32 7, %v2828_v5  ;;  %vm510_vm0 = vcmp.lt.s32.totalorder %v2828_v5, 7  ;;  %v2836_v10 = vadd.s32 16, %v2828_v5  ;;  %v2845_v13 = vadd.s32 8, %v2828_v5  ;;  %v2962_v52 = vld [vmem:[%s4299_s0 + $0x40] sm:$0xff]  ;;  %v2981_v58 = vld [vmem:[%s4299_s0 + $0x48] sm:$0xff] }
   0x5   :  { %v525_v15 = vsel %vm510_vm0, %v494_v6, %v495_v7  ;;  %v2859_v17 = vadd.s32 24, %v2828_v5  ;;  %v2869_v21 = vadd.s32 32, %v2828_v5  ;;  %v523_v23 = vsel %vm510_vm0, %v496_v8, %v497_v11  ;;  %v3002_v0 = vld [vmem:[%s4299_s0 + $0x50] sm:$0xff] }
   0x6   :  { %593 = vrot.lane.b32.xlu0 %v2817_v3, %s2746_s19  ;;  %v2851_v14 = vadd.s32 1, %v72_v9  ;;  %v86_v16 = vand.u32 7, %v2836_v10  ;;  %v79_v18 = vand.u32 7, %v2845_v13  ;;  %v524_v27 = vsel %vm510_vm0, %v495_v7, %v496_v8 }
   0x7   :  { %v4320_v24 = vand.u32 7, %v2859_v17  ;;  %v4319_v28 = vand.u32 7, %v2869_v21  ;;  %v499_v30 = vrot.slane %v2866_v20, 1  ;;  %v2898_v31 = vadd.s32 40, %v2828_v5 }
   0x8   :  { %vm356_vm1 = vcmp.lt.s32.totalorder %v2851_v14, 8  ;;  %v2874_v22 = vadd.s32 1, %v86_v16  ;;  %v2883_v26 = vadd.s32 1, %v79_v18  ;;  %v522_v33 = vsel %vm510_vm0, %v497_v11, %v498_v19  ;;  %v388_v11 = vld [vmem:[%s4300_s2] sm:$0xff] }
   0x9   :  { %v559_v25 = vsel %vm356_vm1, %v525_v15, 0.0  ;;  %v2894_v29 = vadd.s32 1, %v4320_v24  ;;  %v2907_v34 = vadd.s32 1, %v4319_v28  ;;  %v4318_v37 = vand.u32 7, %v2898_v31  ;;  %v389_v15 = vld [vmem:[%s4300_s2 + $0x8] sm:$0xff] }
   0xa   :  { %595 = vrot.lane.b32.xlu0 %v2826_v4, %s2746_s19  ;;  %655 = vrot.lane.b32.xlu1 %v559_v25, %s2747_s26  ;;  %vm358_vm2 = vcmp.lt.s32.totalorder %v2874_v22, 8  ;;  %vm357_vm3 = vcmp.lt.s32.totalorder %v2883_v26, 8  ;;  %v2919_v38 = vadd.s32 48, %v2828_v5  ;;  %v521_v40 = vsel %vm510_vm0, %v498_v19, %v499_v30  ;;  %v390_v19 = vld [vmem:[%s4300_s2 + $0x10] sm:$0xff]  ;;  %v2152_v26 = vld [vmem:[%s4307_s8 + $0x8] sm:$0xff] }
   0xb   :  { %v561_v32 = vsel %vm358_vm2, %v523_v23, 0.0  ;;  %v560_v35 = vsel %vm357_vm3, %v524_v27, 0.0  ;;  %vm359_vm4 = vcmp.lt.s32.totalorder %v2894_v29, 8  ;;  %v500_v41 = vrot.slane %v2915_v36, 1  ;;  %v391_v23 = vld [vmem:[%s4300_s2 + $0x18] sm:$0xff] }
   0xc   :  { %v562_v39 = vsel %vm359_vm4, %v522_v33, 0.0  ;;  %vm360_vm5 = vcmp.lt.s32.totalorder %v2907_v34, 8  ;;  %v2931_v42 = vadd.s32 1, %v4318_v37  ;;  %v4316_v44 = vand.u32 7, %v2919_v38  ;;  %v3036_v33 = vld [vmem:[%s4299_s0 + $0x58] sm:$0xff]  ;;  %v1567_v37 = vld [vmem:[%s4301_s4 + $0x8] sm:$0xff] }
   0xd   :  { %v2940_v45 = vadd.s32 56, %v2828_v5  ;;  %v563_v46 = vsel %vm360_vm5, %v521_v40, 0.0  ;;  %v501_v47 = vrot.slane %v2936_v43, 1  ;;  %v2949_v48 = vadd.s32 64, %v2828_v5 }
   0xe   :  { %659 = vrot.lane.b32.xlu0 %v561_v32, %s2747_s26  ;;  %657 = vrot.lane.b32.xlu1 %v560_v35, %s2747_s26  ;;  %vm361_vm6 = vcmp.lt.s32.totalorder %v2931_v42, 8  ;;  %v520_v49 = vsel %vm510_vm0, %v499_v30, %v500_v41  ;;  %v2956_v50 = vadd.s32 1, %v4316_v44  ;;  %v502_v57 = vrot.slane %v2962_v52, 1  ;;  %v1578_v42 = vld [vmem:[%s4301_s4 + $0x60] sm:$0xff] }
   0xf   :  { %v4315_v51 = vand.u32 7, %v2940_v45  ;;  %v564_v53 = vsel %vm361_vm6, %v520_v49, 0.0  ;;  %v519_v54 = vsel %vm510_vm0, %v500_v41, %v501_v47  ;;  %v4314_v55 = vand.u32 7, %v2949_v48 }
  0x10   :  { %vm362_vm7 = vcmp.lt.s32.totalorder %v2956_v50, 8  ;;  %v2984_v59 = vadd.s32 72, %v2828_v5  ;;  %v503_v62 = vrot.slane %v2981_v58, 1  ;;  %v518_v63 = vsel %vm510_vm0, %v501_v47, %v502_v57  ;;  %v393_v47 = vld [vmem:[%s4300_s2 + $0x28] sm:$0xff] }
  0x11   :  { %v2975_v56 = vadd.s32 1, %v4315_v51  ;;  %v565_v60 = vsel %vm362_vm7, %v519_v54, 0.0  ;;  %v2993_v61 = vadd.s32 1, %v4314_v55  ;;  %v3006_v8 = vadd.s32 80, %v2828_v5  ;;  %v399_v55 = vld [vmem:[%s4300_s2 + $0x58] sm:$0xff] }
  0x12   :  { %599 = vrot.lane.b32.xlu0 %v2842_v12, %s2746_s19  ;;  %661 = vrot.lane.b32.xlu1 %v562_v39, %s2747_s26  ;;  %v4312_v7 = vand.u32 7, %v2984_v59  ;;  %v517_v27 = vsel %vm510_vm0, %v502_v57, %v503_v62  ;;  %v504_v30 = vrot.slane %v3002_v0, 1  ;;  %v3040_v39 = vadd.s32 88, %v2828_v5 }
  0x13   :  { %vm4333_vm8 = vcmp.lt.s32.totalorder %v2975_v56, 8  ;;  %vm4340_vm9 = vcmp.lt.s32.totalorder %v2993_v61, 8  ;;  %v4311_v35 = vand.u32 7, %v3006_v8  ;;  %v2559_v40 = vpack.c.bf16 %v389_v15, %v388_v11  ;;  %v394_v15 = vld [vmem:[%s4300_s2 + $0x30] sm:$0xff] }
  0x14   :  { %v566_v25 = vsel %vm4333_vm8, %v518_v63, 0.0  ;;  %v3031_v32 = vadd.s32 1, %v4312_v7  ;;  %v2563_v41 = vpack.c.bf16 %v391_v23, %v390_v19  ;;  %v567_v49 = vsel %vm4340_vm9, %v517_v27, 0.0  ;;  %v395_v19 = vld [vmem:[%s4300_s2 + $0x38] sm:$0xff] }
  0x15   :  { %v505_v54 = vrot.slane %v3036_v33, 1  ;;  %2560 = vmatprep.subr.bf16.mxu0 %v2559_v40  ;;  %v3059_v57 = vadd.s32 1, %v4311_v35  ;;  %v4310_v63 = vand.u32 7, %v3040_v39  ;;  %v3068_v11 = vadd.s32 96, %v2828_v5 }
  0x16   :  { %663 = vrot.lane.b32.xlu0 %v563_v46, %s2747_s26  ;;  %601 = vrot.lane.b32.xlu1 %v2866_v20, %s2746_s19  ;;  %4353 = vst [vmem:[#allocation2_spill] sm:$0xff] %v3031_v32  ;;  %v392_v46 = vld [vmem:[%s4300_s2 + $0x20] sm:$0xff]  ;;  %vm4328_vm10 = vcmp.lt.s32.totalorder %v3031_v32, 8  ;;  %vm741_vm8 = vcmask 785408   ;;  %v4362_v32 = vand.u32 7, %v2869_v21 }
  0x17   :  { %4354 = vst [vmem:[#allocation3_spill] sm:$0xff] %v3059_v57  ;;  %2562 = vmatpush3.bf16.msra.mxu0 %v2559_v40  ;;  %vm4332_vm11 = vcmp.lt.s32.totalorder %v3059_v57, 8  ;;  %v3087_v40 = vadd.s32 1, %v4310_v63  ;;  %v397_v63 = vld [vmem:[%s4300_s2 + $0x48] sm:$0xff] }
  0x18   :  { %2564 = vmatprep.subr.bf16.mxu0 %v2563_v41 }
  0x19   :  { %4355 = vst [vmem:[#allocation4_spill] sm:$0xff] %v3087_v40  ;;  %vm4326_vm12 = vcmp.lt.s32.totalorder %v3087_v40, 8 }
  0x1a   :  { %603 = vrot.lane.b32.xlu0 %v2915_v36, %s2746_s19  ;;  %665 = vrot.lane.b32.xlu1 %v564_v53, %s2747_s26  ;;  %v516_v53 = vsel %vm510_vm0, %v503_v62, %v504_v30  ;;  %v2567_v62 = vpack.c.bf16 %v393_v47, %v392_v46  ;;  %v3092_v46 = vld [vmem:[%s4299_s0 + $0x68] sm:$0xff]  ;;  %v4313_v47 = vand.u32 7, %v3068_v11 }
  0x1b   :  { %v568_v23 = vsel %vm4328_vm10, %v516_v53, 0.0  ;;  %2566 = vmatpush3.bf16.msra.mxu0 %v2563_v41  ;;  %v396_v53 = vld [vmem:[%s4300_s2 + $0x40] sm:$0xff]  ;;  %vm720_vm10 = vcmask 523264  }
  0x1c   :  { %2568 = vmatprep.subr.bf16.mxu0 %v2567_v62 }
  0x1e   :  { %667 = vrot.lane.b32.xlu0 %v565_v60, %s2747_s26  ;;  %605 = vrot.lane.b32.xlu1 %v2936_v43, %s2746_s19  ;;  %v3064_v60 = vld [vmem:[%s4299_s0 + $0x60] sm:$0xff] }
  0x1f   :  { %v506_v27 = vrot.slane %v3064_v60, 1  ;;  %2570 = vmatpush3.bf16.msra.mxu0 %v2567_v62 }
  0x21   :  { %v514_v41 = vsel %vm510_vm0, %v505_v54, %v506_v27 }
  0x22   :  { %607 = vrot.lane.b32.xlu0 %v2962_v52, %s2746_s19  ;;  %669 = vrot.lane.b32.xlu1 %v566_v25, %s2747_s26  ;;  %v515_v25 = vsel %vm510_vm0, %v504_v30, %v505_v54  ;;  %v2571_v30 = vpack.c.bf16 %v395_v19, %v394_v15  ;;  %v507_v15 = vrot.slane %v3092_v46, 1  ;;  %v3115_v19 = vadd.s32 1, %v4313_v47  ;;  %v398_v47 = vld [vmem:[%s4300_s2 + $0x50] sm:$0xff] }
  0x23   :  { %v569_v35 = vsel %vm4332_vm11, %v515_v25, 0.0  ;;  %v3124_v25 = vadd.s32 112, %v2828_v5  ;;  %v2575_v54 = vpack.c.bf16 %v397_v63, %v396_v53  ;;  %v570_v51 = vsel %vm4326_vm12, %v514_v41, 0.0  ;;  %v3148_v53 = vld [vmem:[%s4299_s0 + $0x78] sm:$0xff] }
  0x24   :  { %4356 = vst [vmem:[#allocation5_spill] sm:$0xff] %v3115_v19  ;;  %2572 = vmatprep.subr.bf16.mxu0 %v2571_v30  ;;  %v513_v62 = vsel %vm510_vm0, %v506_v27, %v507_v15  ;;  %vm4327_vm13 = vcmp.lt.s32.totalorder %v3115_v19, 8  ;;  %v3152_v41 = vadd.s32 120, %v2828_v5  ;;  %v2579_v27 = vpack.c.bf16 %v399_v55, %v398_v47 }
  0x25   :  { %v4321_v44 = vand.u32 7, %v3124_v25  ;;  %2574 = vmatpush3.bf16.msra.mxu0 %v2571_v30  ;;  %v571_v28 = vsel %vm4327_vm13, %v513_v62, 0.0  ;;  %v509_v30 = vrot.slane %v3148_v53, 1  ;;  %vm703_vm13 = vcmask 261120  }
  0x26   :  { %671 = vrot.lane.b32.xlu0 %v567_v49, %s2747_s26  ;;  %609 = vrot.lane.b32.xlu1 %v2981_v58, %s2746_s19  ;;  %v3096_v49 = vadd.s32 104, %v2828_v5  ;;  %v4325_v47 = vand.u32 7, %v3152_v41 }
  0x27   :  { %2576 = vmatprep.subr.bf16.mxu0 %v2575_v54 }
  0x28   :  { %v4317_v7 = vand.u32 7, %v3096_v49 }
  0x29   :  { %2578 = vmatpush3.bf16.msra.mxu0 %v2575_v54  ;;  %v526_v54 = vsel %vm510_vm0, %v509_v30, %v494_v6 }
  0x2a   :  { %611 = vrot.lane.b32.xlu0 %v3002_v0, %s2746_s19  ;;  %673 = vrot.lane.b32.xlu1 %v568_v23, %s2747_s26  ;;  %v3120_v23 = vld [vmem:[%s4299_s0 + $0x70] sm:$0xff] }
  0x2b   :  { %v508_v63 = vrot.slane %v3120_v23, 1  ;;  %2580 = vmatprep.subr.bf16.mxu0 %v2579_v27 }
  0x2d   :  { %v512_v55 = vsel %vm510_vm0, %v507_v15, %v508_v63  ;;  %v511_v15 = vsel %vm510_vm0, %v508_v63, %v509_v30  ;;  %2582 = vmatpush3.bf16.msra.mxu0 %v2579_v27 }
  0x2e   :  { %675 = vrot.lane.b32.xlu0 %v569_v35, %s2747_s26  ;;  %613 = vrot.lane.b32.xlu1 %v3036_v33, %s2746_s19  ;;  %v3143_v35 = vadd.s32 1, %v4317_v7  ;;  %v1566_v7 = vld [vmem:[%s4301_s4] sm:$0xff] }
  0x2f   :  { %v3174_v24 = vpack.c.bf16 %v1567_v37, %v1566_v7  ;;  %v3196_v37 = vld [vmem:[%s4302_s1 + $0x8] sm:$0xff] }
  0x30   :  { %4357 = vst [vmem:[#allocation6_spill] sm:$0xff] %v3143_v35  ;;  %vm4322_vm14 = vcmp.lt.s32.totalorder %v3143_v35, 8  ;;  %v1598_v27 = vrot.slane %v3196_v37, 1  ;;  %v417_v35 = vrot.slane %v2842_v12, 7 }
  0x31   :  { %v572_v62 = vsel %vm4322_vm14, %v512_v55, 0.0  ;;  %2608 = vmatprep.subr.bf16.mxu0 %v3174_v24 }
  0x32   :  { %615 = vrot.lane.b32.xlu0 %v3064_v60, %s2746_s19  ;;  %677 = vrot.lane.b32.xlu1 %v570_v51, %s2747_s26  ;;  %v3171_v51 = vadd.s32 1, %v4321_v44  ;;  %v3186_v44 = vadd.s32 1, %v4325_v47 }
  0x34   :  { %4358 = vst [vmem:[#allocation7_spill] sm:$0xff] %v3171_v51  ;;  %vm4324_vm15 = vcmp.lt.s32.totalorder %v3171_v51, 8  ;;  %4359 = vst [vmem:[#allocation8_spill] sm:$0xff] %v3186_v44  ;;  %vm4323_vm14 = vcmp.lt.s32.totalorder %v3186_v44, 8  ;;  %v416_v44 = vrot.slane %v2812_v2, 7 }
  0x35   :  { %v573_v7 = vsel %vm4324_vm15, %v511_v15, 0.0  ;;  %v574_v55 = vsel %vm4323_vm14, %v526_v54, 0.0  ;;  %v3234_v54 = vadd.s32 4294967295, %v72_v9  ;;  %vm429_vm14 = vcmp.lt.s32.totalorder %v2828_v5, 1 }
  0x36   :  { %679 = vrot.lane.b32.xlu0 %v571_v28, %s2747_s26  ;;  %617 = vrot.lane.b32.xlu1 %v3092_v46, %s2746_s19  ;;  %v3191_v28 = vld [vmem:[%s4302_s1] sm:$0xff] }
  0x37   :  { %v1597_v63 = vrot.slane %v3191_v28, 1  ;;  %vm276_vm15 = vcmp.ge.s32.totalorder %v3234_v54, 0  ;;  %v2151_v54 = vld [vmem:[%s4307_s8] sm:$0xff] }
  0x39   :  { %v1600_v30 = vsel %vm510_vm0, %v1598_v27, %v1597_v63 }
  0x3a   :  { %619 = vrot.lane.b32.xlu0 %v3120_v23, %s2746_s19  ;;  %681 = vrot.lane.b32.xlu1 %v572_v62, %s2747_s26  ;;  %v1599_v62 = vsel %vm510_vm0, %v1597_v63, %v1598_v27  ;;  %v1602_v15 = vsel %vm357_vm3, %v1600_v30, 0.0  ;;  %v3240_v27 = vadd.s32 4294967295, %v86_v16 }
  0x3b   :  { %v1601_v6 = vsel %vm356_vm1, %v1599_v62, 0.0  ;;  %v414_v62 = vrot.slane %v2817_v3, 7 }
  0x3c   :  { %4360 = vst [vmem:[#allocation9_spill] sm:$0xff] %v3240_v27  ;;  %vm4339_vm12 = vcmp.ge.s32.totalorder %v3240_v27, 0 }
  0x3e   :  { %683 = vrot.lane.b32.xlu0 %v573_v7, %s2747_s26  ;;  %621 = vrot.lane.b32.xlu1 %v3148_v53, %s2746_s19  ;;  %v413_v7 = vrot.slane %v2807_v1, 7 }
  0x40   :  { %v444_v13 = vsel %vm429_vm14, %v413_v7, %v414_v62 }
  0x42   :  { %685 = vrot.lane.b32.xlu1 %v574_v55, %s2747_s26  ;;  %1605 = vrot.lane.b32.xlu0 %v3191_v28, %s2746_s19  ;;  %v4330_v55 = vrot.slane %v3148_v53, 7 }
  0x44   :  { %v445_v9 = vsel %vm429_vm14, %v4330_v55, %v413_v7  ;;  %v4361_v55 = vand.u32 7, %v2859_v17  ;;  %v3272_v17 = vadd.s32 4294967295, %v4362_v32  ;;  %v1568_v7 = vld [vmem:[%s4301_s4 + $0x10] sm:$0xff] }
  0x45   :  { %v478_v16 = vsel %vm276_vm15, %v445_v9, 0.0 }
  0x46   :  { %1607 = vrot.lane.b32.xlu1 %v3196_v37, %s2746_s19  ;;  %1613 = vrot.lane.b32.xlu0 %v1601_v6, %s2747_s26  ;;  %v415_v6 = vrot.slane %v2826_v4, 7  ;;  %v3261_v51 = vadd.s32 4294967295, %v4361_v55  ;;  %vm4342_vm9 = vcmp.ge.s32.totalorder %v3272_v17, 0 }
  0x48   :  { %v443_v10 = vsel %vm429_vm14, %v414_v62, %v415_v6  ;;  %v1569_v62 = vld [vmem:[%s4301_s4 + $0x18] sm:$0xff]  ;;  %v442_v21 = vsel %vm429_vm14, %v415_v6, %v416_v44 }
  0x4a   :  { %1615 = vrot.lane.b32.xlu1 %v1602_v15, %s2747_s26  ;;  %v3251_v15 = vadd.s32 4294967295, %v79_v18  ;;  %v480_v18 = vsel %vm4339_vm12, %v443_v10, 0.0  ;;  %vm4343_vm12 = vcmp.ge.s32.totalorder %v3261_v51, 0 }
  0x4c   :  { %vm277_vm11 = vcmp.ge.s32.totalorder %v3251_v15, 0  ;;  %v2154_v15 = vld [vmem:[%s4307_s8 + $0x18] sm:$0xff] }
  0x4d   :  { %v479_v55 = vsel %vm277_vm11, %v444_v13, 0.0  ;;  %v2611_v13 = vpack.c.bf16 %v1569_v62, %v1568_v7  ;;  %v419_v7 = vrot.slane %v2915_v36, 7 }
  0x74   :  { %v592_v63 = vpop.permute.xlu0 %591  ;;  %v598_v30 = vpop.permute.xlu1 %597 }
  0x75   :  { %v704_v9 = vsel %vm703_vm13, %v478_v16, %v592_v63  ;;  %v441_v16 = vsel %vm429_vm14, %v416_v44, %v417_v35  ;;  %v4363_v44 = vand.u32 7, %v2898_v31 }
  0x78   :  { %v594_v47 = vpop.permute.xlu0 %593 }
  0x79   :  { %v705_v63 = vsel %vm703_vm13, %v479_v55, %v594_v47  ;;  %v3305_v47 = vadd.s32 4294967295, %v4363_v44  ;;  %v482_v55 = vsel %vm4342_vm9, %v441_v16, 0.0 }
  0x7b   :  { %vm4345_vm9 = vcmp.ge.s32.totalorder %v3305_v47, 0 }
  0x7c   :  { %v596_v40 = vpop.permute.xlu0 %595  ;;  %v656_v19 = vpop.permute.xlu1 %655 }
  0x7d   :  { %v721_v57 = vsel %vm720_vm10, %v704_v9, %v656_v19  ;;  %v706_v32 = vsel %vm703_vm13, %v480_v18, %v596_v40  ;;  %v481_v9 = vsel %vm4343_vm12, %v442_v21, 0.0  ;;  %v1571_v40 = vld [vmem:[%s4301_s4 + $0x28] sm:$0xff]  ;;  %v418_v18 = vrot.slane %v2866_v20, 7 }
  0x7e   :  { %2414 = vmatprep.mubr.msk.f32.mxu0 %vm741_vm8, %v721_v57  ;;  %v1570_v57 = vld [vmem:[%s4301_s4 + $0x20] sm:$0xff]  ;;  %v707_v62 = vsel %vm703_vm13, %v481_v9, %v598_v30 }
  0x80   :  { %v660_v19 = vpop.permute.xlu0 %659  ;;  %v658_v10 = vpop.permute.xlu1 %657 }
  0x81   :  { %v723_v27 = vsel %vm720_vm10, %v706_v32, %v660_v19  ;;  %v722_v6 = vsel %vm720_vm10, %v705_v63, %v658_v10  ;;  %v4364_v63 = vand.u32 7, %v2919_v38  ;;  %v2615_v19 = vpack.c.bf16 %v1571_v40, %v1570_v57 }
  0x82   :  { %2415 = vmatmul.mubr.msk.f32.vlgmr.msra.gmra.mrb[0].mxu0 %vm741_vm8, %v722_v6  ;;  %v440_v38 = vsel %vm429_vm14, %v417_v35, %v418_v18  ;;  %v439_v6 = vsel %vm429_vm14, %v418_v18, %v419_v7  ;;  %v1575_v35 = vld [vmem:[%s4301_s4 + $0x48] sm:$0xff] }
  0x83   :  { %2417 = vmatprep.mubr.msk.f32.mxu0 %vm741_vm8, %v723_v27  ;;  %2610 = vmatpush3.bf16.msra.mxu0 %v3174_v24  ;;  %v3316_v31 = vadd.s32 4294967295, %v4364_v63  ;;  %v1572_v27 = vld [vmem:[%s4301_s4 + $0x30] sm:$0xff]  ;;  %v1573_v24 = vld [vmem:[%s4301_s4 + $0x38] sm:$0xff]  ;;  %v483_v44 = vsel %vm4345_vm9, %v440_v38, 0.0 }
  0x84   :  { %v600_v21 = vpop.permute.xlu0 %599  ;;  %v662_v32 = vpop.permute.xlu1 %661  ;;  %2612 = vmatprep.subr.bf16.mxu0 %v2611_v13  ;;  %v2619_v57 = vpack.c.bf16 %v1573_v24, %v1572_v27  ;;  %v4366_v24 = vand.u32 7, %v2949_v48 }
  0x85   :  { %v724_v10 = vsel %vm720_vm10, %v707_v62, %v662_v32  ;;  %v708_v30 = vsel %vm703_vm13, %v482_v55, %v600_v21  ;;  %vm4344_vm12 = vcmp.ge.s32.totalorder %v3316_v31, 0  ;;  %v1574_v55 = vld [vmem:[%s4301_s4 + $0x40] sm:$0xff]  ;;  %v420_v62 = vrot.slane %v2936_v43, 7 }
  0x86   :  { %2418 = vmatmul.mubr.msk.f32.gmra.mrb[2].mxu0 %vm741_vm8, %v724_v10  ;;  %v484_v21 = vsel %vm4344_vm12, %v439_v6, 0.0  ;;  %v421_v32 = vrot.slane %v2962_v52, 7 }
  0x87   :  { %2614 = vmatpush3.bf16.msra.mxu0 %v2611_v13  ;;  %v4365_v13 = vand.u32 7, %v2940_v45  ;;  %v2623_v45 = vpack.c.bf16 %v1575_v35, %v1574_v55  ;;  %v438_v48 = vsel %vm429_vm14, %v419_v7, %v420_v62 }
  0x88   :  { %v664_v16 = vpop.permute.xlu0 %663  ;;  %v602_v9 = vpop.permute.xlu1 %601  ;;  %2616 = vmatprep.subr.bf16.mxu0 %v2615_v19 }
  0x89   :  { %v725_v40 = vsel %vm720_vm10, %v708_v30, %v664_v16  ;;  %v3345_v18 = vadd.s32 4294967295, %v4365_v13  ;;  %v709_v63 = vsel %vm703_vm13, %v483_v44, %v602_v9  ;;  %v3354_v30 = vadd.s32 4294967295, %v4366_v24  ;;  %v1576_v16 = vld [vmem:[%s4301_s4 + $0x50] sm:$0xff] }
  0x8a   :  { %2420 = vmatprep.mubr.msk.f32.mxu0 %vm741_vm8, %v725_v40  ;;  %v437_v44 = vsel %vm429_vm14, %v420_v62, %v421_v32  ;;  %v423_v62 = vrot.slane %v3002_v0, 7 }
  0x8b   :  { %2618 = vmatpush3.bf16.msra.mxu0 %v2615_v19  ;;  %v1577_v19 = vld [vmem:[%s4301_s4 + $0x58] sm:$0xff]  ;;  %vm4347_vm12 = vcmp.ge.s32.totalorder %v3345_v18, 0  ;;  %vm4346_vm9 = vcmp.ge.s32.totalorder %v3354_v30, 0 }
  0x8c   :  { %v604_v10 = vpop.permute.xlu0 %603  ;;  %v666_v27 = vpop.permute.xlu1 %665  ;;  %2620 = vmatprep.subr.bf16.mxu0 %v2619_v57  ;;  %v2627_v55 = vpack.c.bf16 %v1577_v19, %v1576_v16  ;;  %v485_v13 = vsel %vm4347_vm12, %v438_v48, 0.0 }
  0x8d   :  { %v726_v38 = vsel %vm720_vm10, %v709_v63, %v666_v27  ;;  %v710_v9 = vsel %vm703_vm13, %v484_v21, %v604_v10  ;;  %v4367_v21 = vand.u32 7, %v2984_v59  ;;  %v486_v63 = vsel %vm4346_vm9, %v437_v44, 0.0 }
  0x8e   :  { %2421 = vmatmul.mubr.msk.f32.gmra.mrb[4].mxu0 %vm741_vm8, %v726_v38  ;;  %v4368_v38 = vand.u32 7, %v3006_v8  ;;  %v4369_v44 = vand.u32 7, %v3040_v39 }
  0x8f   :  { %2622 = vmatpush3.bf16.msra.mxu0 %v2619_v57  ;;  %v3377_v7 = vadd.s32 4294967295, %v4367_v21  ;;  %v422_v57 = vrot.slane %v2981_v58, 7 }
  0x90   :  { %v668_v6 = vpop.permute.xlu0 %667  ;;  %v606_v40 = vpop.permute.xlu1 %605  ;;  %2624 = vmatprep.subr.bf16.mxu0 %v2623_v45  ;;  %v3386_v16 = vadd.s32 4294967295, %v4368_v38 }
  0x91   :  { %v727_v35 = vsel %vm720_vm10, %v710_v9, %v668_v6  ;;  %v711_v10 = vsel %vm703_vm13, %v485_v13, %v606_v40  ;;  %vm4348_vm9 = vcmp.ge.s32.totalorder %v3377_v7, 0  ;;  %v435_v8 = vsel %vm429_vm14, %v422_v57, %v423_v62 }
  0x92   :  { %2423 = vmatprep.mubr.msk.f32.mxu0 %vm741_vm8, %v727_v35  ;;  %vm4349_vm12 = vcmp.ge.s32.totalorder %v3386_v16, 0  ;;  %v3403_v35 = vadd.s32 4294967295, %v4369_v44  ;;  %v425_v13 = vrot.slane %v3064_v60, 7 }
  0x93   :  { %2626 = vmatpush3.bf16.msra.mxu0 %v2623_v45  ;;  %v436_v45 = vsel %vm429_vm14, %v421_v32, %v422_v57  ;;  %v424_v32 = vrot.slane %v3036_v33, 7 }
  0x94   :  { %v608_v27 = vpop.permute.xlu0 %607  ;;  %v670_v24 = vpop.permute.xlu1 %669  ;;  %2628 = vmatprep.subr.bf16.mxu0 %v2627_v55  ;;  %v487_v40 = vsel %vm4348_vm9, %v436_v45, 0.0  ;;  %vm4350_vm9 = vcmp.ge.s32.totalorder %v3403_v35, 0 }
  0x95   :  { %v728_v59 = vsel %vm720_vm10, %v711_v10, %v670_v24  ;;  %v712_v19 = vsel %vm703_vm13, %v486_v63, %v608_v27  ;;  %v4370_v10 = vand.u32 7, %v3068_v11  ;;  %v434_v38 = vsel %vm429_vm14, %v423_v62, %v424_v32 }
  0x96   :  { %2424 = vmatmul.mubr.msk.f32.gmra.mrb[6].mxu0 %vm741_vm8, %v728_v59  ;;  %v433_v11 = vsel %vm429_vm14, %v424_v32, %v425_v13  ;;  %v426_v62 = vrot.slane %v3092_v46, 7 }
  0x97   :  { %2630 = vmatpush3.bf16.msra.mxu0 %v2627_v55  ;;  %v488_v55 = vsel %vm4349_vm12, %v435_v8, 0.0  ;;  %v3412_v27 = vadd.s32 4294967295, %v4370_v10 }
  0x98   :  { %v672_v9 = vpop.permute.xlu0 %671  ;;  %v610_v48 = vpop.permute.xlu1 %609  ;;  %v432_v10 = vsel %vm429_vm14, %v425_v13, %v426_v62 }
  0x99   :  { %v729_v6 = vsel %vm720_vm10, %v712_v19, %v672_v9  ;;  %v713_v21 = vsel %vm703_vm13, %v487_v40, %v610_v48  ;;  %vm4351_vm12 = vcmp.ge.s32.totalorder %v3412_v27, 0  ;;  %v489_v9 = vsel %vm4350_vm9, %v434_v38, 0.0 }
  0x9a   :  { %2426 = vmatprep.mubr.msk.f32.mxu0 %vm741_vm8, %v729_v6  ;;  %v4371_v48 = vand.u32 7, %v3096_v49  ;;  %v490_v6 = vsel %vm4351_vm12, %v433_v11, 0.0  ;;  %v427_v40 = vrot.slane %v3120_v23, 7 }
  0x9c   :  { %v612_v57 = vpop.permute.xlu0 %611  ;;  %v674_v63 = vpop.permute.xlu1 %673  ;;  %v3429_v8 = vadd.s32 4294967295, %v4371_v48 }
  0x9d   :  { %v730_v24 = vsel %vm720_vm10, %v713_v21, %v674_v63  ;;  %v714_v39 = vsel %vm703_vm13, %v488_v55, %v612_v57  ;;  %v4372_v21 = vand.u32 7, %v3124_v25  ;;  %v431_v25 = vsel %vm429_vm14, %v426_v62, %v427_v40 }
  0x9e   :  { %2427 = vmatmul.mubr.msk.f32.gmra.mrb[8].mxu0 %vm741_vm8, %v730_v24  ;;  %vm4352_vm9 = vcmp.ge.s32.totalorder %v3429_v8, 0 }
  0x9f   :  { %v3438_v57 = vadd.s32 4294967295, %v4372_v21 }
  0xa0   :  { %v676_v59 = vpop.permute.xlu0 %675  ;;  %v614_v19 = vpop.permute.xlu1 %613 }
  0xa1   :  { %v731_v45 = vsel %vm720_vm10, %v714_v39, %v676_v59  ;;  %v715_v44 = vsel %vm703_vm13, %v489_v9, %v614_v19  ;;  %vm290_vm12 = vcmp.ge.s32.totalorder %v3438_v57, 0  ;;  %v491_v59 = vsel %vm4352_vm9, %v432_v10, 0.0 }
  0xa2   :  { %2429 = vmatprep.mubr.msk.f32.mxu0 %vm741_vm8, %v731_v45  ;;  %v4373_v19 = vand.u32 7, %v3152_v41  ;;  %v492_v13 = vsel %vm290_vm12, %v431_v25, 0.0  ;;  %v1591_v45 = vrot.slane %v3191_v28, 7  ;;  %v1592_v9 = vrot.slane %v3196_v37, 7 }
  0xa3   :  { %v4374_v41 = vrot.slane %v3148_v53, 7 }
  0xa4   :  { %v616_v32 = vpop.permute.xlu0 %615  ;;  %v678_v55 = vpop.permute.xlu1 %677  ;;  %v3455_v11 = vadd.s32 4294967295, %v4373_v19 }
  0xa5   :  { %v732_v63 = vsel %vm720_vm10, %v715_v44, %v678_v55  ;;  %v716_v49 = vsel %vm703_vm13, %v490_v6, %v616_v32  ;;  %v430_v55 = vsel %vm429_vm14, %v427_v40, %v4374_v41  ;;  %v1593_v40 = vsel %vm429_vm14, %v1591_v45, %v1592_v9 }
  0xa6   :  { %2430 = vmatmul.mubr.msk.f32.gmra.mrb[10].mxu0 %vm741_vm8, %v732_v63  ;;  %vm291_vm9 = vcmp.ge.s32.totalorder %v3455_v11, 0 }
  0xa8   :  { %v680_v24 = vpop.permute.xlu0 %679  ;;  %v618_v39 = vpop.permute.xlu1 %617 }
  0xa9   :  { %v733_v38 = vsel %vm720_vm10, %v716_v49, %v680_v24  ;;  %v717_v48 = vsel %vm703_vm13, %v491_v59, %v618_v39  ;;  %v1594_v49 = vsel %vm429_vm14, %v1592_v9, %v1591_v45  ;;  %v493_v24 = vsel %vm291_vm9, %v430_v55, 0.0  ;;  %v400_v9 = vld [vmem:[%s4300_s2 + $0x60] sm:$0xff]  ;;  %v401_v55 = vld [vmem:[%s4300_s2 + $0x68] sm:$0xff] }
  0xaa   :  { %2432 = vmatprep.mubr.msk.f32.mxu0 %vm741_vm8, %v733_v38  ;;  %v1595_v39 = vsel %vm276_vm15, %v1594_v49, 0.0  ;;  %v403_v49 = vld [vmem:[%s4300_s2 + $0x78] sm:$0xff] }
  0xac   :  { %v620_v62 = vpop.permute.xlu0 %619  ;;  %v682_v6 = vpop.permute.xlu1 %681 }
  0xad   :  { %v734_v44 = vsel %vm720_vm10, %v717_v48, %v682_v6  ;;  %v718_v32 = vsel %vm703_vm13, %v492_v13, %v620_v62  ;;  %v1596_v48 = vsel %vm277_vm11, %v1593_v40, 0.0 }
  0xae   :  { %2433 = vmatmul.mubr.msk.f32.gmra.mrb[12].mxu0 %vm741_vm8, %v734_v44 }
  0xb0   :  { %v684_v21 = vpop.permute.xlu0 %683  ;;  %v622_v63 = vpop.permute.xlu1 %621 }
  0xb1   :  { %v735_v10 = vsel %vm720_vm10, %v718_v32, %v684_v21  ;;  %v719_v25 = vsel %vm703_vm13, %v493_v24, %v622_v63  ;;  %v402_v21 = vld [vmem:[%s4300_s2 + $0x70] sm:$0xff]  ;;  %v2583_v63 = vpack.c.bf16 %v401_v55, %v400_v9  ;;  %v3504_v24 = vsub.s32 0, %v2828_v5 }
  0xb2   :  { %2435 = vmatprep.mubr.msk.f32.mxu0 %vm741_vm8, %v735_v10  ;;  %v2587_v10 = vpack.c.bf16 %v403_v49, %v402_v21 }
  0xb3   :  { %2584 = vmatprep.subr.bf16.mxu1 %v2583_v63 }
  0xb4   :  { %v686_v38 = vpop.permute.xlu1 %685  ;;  %v1606_v59 = vpop.permute.xlu0 %1605  ;;  %2586 = vmatpush3.bf16.msra.mxu1 %v2583_v63 }
  0xb5   :  { %v736_v19 = vsel %vm720_vm10, %v719_v25, %v686_v38  ;;  %v1619_v13 = vsel %vm703_vm13, %v1595_v39, %v1606_v59  ;;  %2588 = vmatprep.subr.bf16.mxu1 %v2587_v10  ;;  %v404_v39 = vld [vmem:[%s4300_s2 + $0x80] sm:$0xff]  ;;  %v405_v25 = vld [vmem:[%s4300_s2 + $0x88] sm:$0xff] }
  0xb6   :  { %2436 = vmatmul.mubr.msk.f32.gmra.mrb[14].mxu0 %vm741_vm8, %v736_v19  ;;  %v3515_v38 = vld [vmem:[%s4303_s3] sm:$0x3]  ;;  %v2591_v59 = vpack.c.bf16 %v405_v25, %v404_v39  ;;  %v406_v19 = vld [vmem:[%s4300_s2 + $0x90] sm:$0xff] }
  0xb7   :  { %v3519_v40 = vrot.slane %v3515_v38, %v3504_v24 }
  0xb8   :  { %v1608_v62 = vpop.permute.xlu1 %1607  ;;  %v1614_v6 = vpop.permute.xlu0 %1613  ;;  %2590 = vmatpush3.bf16.msra.mxu1 %v2587_v10 }
  0xb9   :  { %v1621_v44 = vsel %vm720_vm10, %v1619_v13, %v1614_v6  ;;  %v1620_v32 = vsel %vm703_vm13, %v1596_v48, %v1608_v62  ;;  %2592 = vmatprep.subr.bf16.mxu1 %v2591_v59  ;;  %v407_v13 = vld [vmem:[%s4300_s2 + $0x98] sm:$0xff] }
  0xba   :  { %2510 = vmatprep.mubr.msk.f32.mxu0 %vm741_vm8, %v1621_v44  ;;  %v2595_v48 = vpack.c.bf16 %v407_v13, %v406_v19  ;;  %v410_v19 = vld [vmem:[%s4300_s2 + $0xb0] sm:$0xff]  ;;  %v411_v13 = vld [vmem:[%s4300_s2 + $0xb8] sm:$0xff] }
  0xbc   :  { %v1616_v41 = vpop.permute.xlu1 %1615  ;;  %2594 = vmatpush3.bf16.msra.mxu1 %v2591_v59 }
  0xbd   :  { %v1622_v45 = vsel %vm720_vm10, %v1620_v32, %v1616_v41  ;;  %2596 = vmatprep.subr.bf16.mxu1 %v2595_v48  ;;  %v408_v41 = vld [vmem:[%s4300_s2 + $0xa0] sm:$0xff] }
  0xbe   :  { %2511 = vmatmul.mubr.msk.f32.vlgmr.msra.gmra.mrb[16].mxu0 %vm741_vm8, %v1622_v45  ;;  %v409_v45 = vld [vmem:[%s4300_s2 + $0xa8] sm:$0xff] }
  0xbf   :  { %v2599_v55 = vpack.c.bf16 %v409_v45, %v408_v41 }
  0xc0   :  { %2598 = vmatpush3.bf16.msra.mxu1 %v2595_v48 }
  0xc1   :  { %2600 = vmatprep.subr.bf16.mxu1 %v2599_v55 }
  0xc4   :  { %2602 = vmatpush3.bf16.msra.mxu1 %v2599_v55 }
 0x155   :  { %v2416_v62 = vpop.f32.mrb[0].mxu0 }
 0x156   :  { %v862_v6 = vadd.f32 %v2416_v62, %v3519_v40  ;;  %v856_v44 = vpop.f32.mrb[1].mxu0  ;;  %v2603_v62 = vpack.c.bf16 %v411_v13, %v410_v19 }
 0x157   :  { %v857_v32 = vadd.f32 %v856_v44, %v3519_v40 }
 0x158   :  { %v936_v9 = vmax.f32 %v862_v6, 0.0  ;;  %2604 = vmatprep.subr.bf16.mxu1 %v2603_v62 }
 0x159   :  { %v935_v21 = vmax.f32 %v857_v32, 0.0  ;;  %v2419_v63 = vpop.f32.mrb[2].mxu0  ;;  %2606 = vmatpush3.bf16.msra.mxu1 %v2603_v62 }
 0x15a   :  { %v3536_v49 = vadd.f32 %v936_v9, %v2817_v3  ;;  %v872_v10 = vadd.f32 %v2419_v63, %v3519_v40  ;;  %v866_v39 = vpop.f32.mrb[3].mxu0 }
 0x15b   :  { %v3540_v25 = vadd.f32 %v935_v21, %v2807_v1  ;;  %v867_v59 = vadd.f32 %v866_v39, %v3519_v40 }
 0x15c   :  { %v938_v3 = vmax.f32 %v872_v10, 0.0  ;;  %1081 = vrot.lane.b32.xlu1 %v3536_v49, %s2746_s19  ;;  %v1016_v48 = vrot.slane %v3536_v49, 1 }
 0x15d   :  { %v937_v1 = vmax.f32 %v867_v59, 0.0  ;;  %1079 = vrot.lane.b32.xlu0 %v3540_v25, %s2746_s19  ;;  %v1015_v6 = vrot.slane %v3540_v25, 1 }
 0x15e   :  { %v3556_v44 = vadd.f32 %v938_v3, %v2812_v2 }
 0x15f   :  { %v3559_v32 = vadd.f32 %v937_v1, %v2826_v4  ;;  %v1045_v41 = vsel %vm510_vm0, %v1015_v6, %v1016_v48 }
 0x160   :  { %1085 = vrot.lane.b32.xlu1 %v3556_v44, %s2746_s19  ;;  %v1047_v45 = vsel %vm356_vm1, %v1045_v41, 0.0  ;;  %v1018_v4 = vrot.slane %v3556_v44, 1 }
 0x161   :  { %v2422_v9 = vpop.f32.mrb[4].mxu0  ;;  %1143 = vrot.lane.b32.xlu0 %v1047_v45, %s2747_s26  ;;  %v1017_v2 = vrot.slane %v3559_v32, 1 }
 0x162   :  { %v882_v55 = vadd.f32 %v2422_v9, %v3519_v40  ;;  %v876_v21 = vpop.f32.mrb[5].mxu0 }
 0x163   :  { %v877_v63 = vadd.f32 %v876_v21, %v3519_v40  ;;  %v1043_v59 = vsel %vm510_vm0, %v1017_v2, %v1018_v4  ;;  %v1044_v62 = vsel %vm510_vm0, %v1016_v48, %v1017_v2 }
 0x164   :  { %v940_v10 = vmax.f32 %v882_v55, 0.0  ;;  %v1049_v3 = vsel %vm358_vm2, %v1043_v59, 0.0  ;;  %v1048_v55 = vsel %vm357_vm3, %v1044_v62, 0.0  ;;  %vm4375_vm2 = vcmp.lt.s32.totalorder %v2993_v61, 8 }
 0x165   :  { %v939_v39 = vmax.f32 %v877_v63, 0.0  ;;  %1083 = vrot.lane.b32.xlu0 %v3559_v32, %s2746_s19 }
 0x166   :  { %v3579_v19 = vadd.f32 %v940_v10, %v2866_v20 }
 0x167   :  { %v3582_v13 = vadd.f32 %v939_v39, %v2842_v12 }
 0x168   :  { %1089 = vrot.lane.b32.xlu1 %v3579_v19, %s2746_s19  ;;  %v1020_v20 = vrot.slane %v3579_v19, 1 }
 0x169   :  { %v2425_v1 = vpop.f32.mrb[6].mxu0  ;;  %1147 = vrot.lane.b32.xlu0 %v1049_v3, %s2747_s26  ;;  %v1019_v41 = vrot.slane %v3582_v13, 1 }
 0x16a   :  { %v892_v45 = vadd.f32 %v2425_v1, %v3519_v40  ;;  %v886_v12 = vpop.f32.mrb[7].mxu0 }
 0x16b   :  { %v887_v9 = vadd.f32 %v886_v12, %v3519_v40  ;;  %v1041_v48 = vsel %vm510_vm0, %v1019_v41, %v1020_v20  ;;  %v1042_v39 = vsel %vm510_vm0, %v1018_v4, %v1019_v41 }
 0x16c   :  { %v942_v22 = vmax.f32 %v892_v45, 0.0  ;;  %1145 = vrot.lane.b32.xlu1 %v1048_v55, %s2747_s26  ;;  %v1051_v10 = vsel %vm360_vm5, %v1041_v48, 0.0  ;;  %v1050_v45 = vsel %vm359_vm4, %v1042_v39, 0.0  ;;  %vm4376_vm4 = vcmp.lt.s32.totalorder %v2975_v56, 8  ;;  %v4377_v56 = vld [vmem:[#allocation3_spill] sm:$0xff] }
 0x16d   :  { %v941_v21 = vmax.f32 %v887_v9, 0.0  ;;  %1087 = vrot.lane.b32.xlu0 %v3582_v13, %s2746_s19  ;;  %vm4378_vm5 = vcmp.lt.s32.totalorder %v4377_v56, 8 }
 0x16e   :  { %v3603_v2 = vadd.f32 %v942_v22, %v2936_v43 }
 0x16f   :  { %v3606_v63 = vadd.f32 %v941_v21, %v2915_v36 }
 0x170   :  { %1093 = vrot.lane.b32.xlu1 %v3603_v2, %s2746_s19  ;;  %v1022_v43 = vrot.slane %v3603_v2, 1 }
 0x171   :  { %v2428_v59 = vpop.f32.mrb[8].mxu0  ;;  %1151 = vrot.lane.b32.xlu0 %v1051_v10, %s2747_s26  ;;  %v1021_v3 = vrot.slane %v3606_v63, 1 }
 0x172   :  { %v902_v62 = vadd.f32 %v2428_v59, %v3519_v40  ;;  %v896_v36 = vpop.f32.mrb[9].mxu0 }
 0x173   :  { %v897_v1 = vadd.f32 %v896_v36, %v3519_v40  ;;  %v1039_v4 = vsel %vm510_vm0, %v1021_v3, %v1022_v43  ;;  %v1040_v55 = vsel %vm510_vm0, %v1020_v20, %v1021_v3  ;;  %v1579_v36 = vld [vmem:[%s4301_s4 + $0x68] sm:$0xff] }
 0x174   :  { %v944_v34 = vmax.f32 %v902_v62, 0.0  ;;  %1149 = vrot.lane.b32.xlu1 %v1050_v45, %s2747_s26  ;;  %v1053_v29 = vsel %vm362_vm7, %v1039_v4, 0.0  ;;  %v1052_v39 = vsel %vm361_vm6, %v1040_v55, 0.0  ;;  %v3668_v45 = vpack.c.bf16 %v1579_v36, %v1578_v42  ;;  %v4379_v36 = vld [vmem:[#allocation2_spill] sm:$0xff] }
 0x175   :  { %v943_v12 = vmax.f32 %v897_v1, 0.0  ;;  %1091 = vrot.lane.b32.xlu0 %v3606_v63, %s2746_s19  ;;  %vm4380_vm6 = vcmp.lt.s32.totalorder %v4379_v36, 8 }
 0x176   :  { %v3627_v41 = vadd.f32 %v944_v34, %v2981_v58  ;;  %2632 = vmatprep.subr.bf16.mxu1 %v3668_v45 }
 0x177   :  { %v3630_v9 = vadd.f32 %v943_v12, %v2962_v52 }
 0x178   :  { %1097 = vrot.lane.b32.xlu1 %v3627_v41, %s2746_s19  ;;  %v1024_v58 = vrot.slane %v3627_v41, 1 }
 0x179   :  { %v2431_v22 = vpop.f32.mrb[10].mxu0  ;;  %1155 = vrot.lane.b32.xlu0 %v1053_v29, %s2747_s26  ;;  %v1023_v21 = vrot.slane %v3630_v9, 1 }
 0x17a   :  { %v912_v48 = vadd.f32 %v2431_v22, %v3519_v40  ;;  %v906_v52 = vpop.f32.mrb[11].mxu0 }
 0x17b   :  { %v907_v10 = vadd.f32 %v906_v52, %v3519_v40  ;;  %v1037_v20 = vsel %vm510_vm0, %v1023_v21, %v1024_v58 }
 0x17c   :  { %v946_v50 = vmax.f32 %v912_v48, 0.0  ;;  %1153 = vrot.lane.b32.xlu1 %v1052_v39, %s2747_s26  ;;  %v1055_v1 = vsel %vm4375_vm2, %v1037_v20, 0.0 }
 0x17d   :  { %v945_v59 = vmax.f32 %v907_v10, 0.0  ;;  %1095 = vrot.lane.b32.xlu0 %v3630_v9, %s2746_s19 }
 0x17e   :  { %v3651_v3 = vadd.f32 %v946_v50, %v3036_v33  ;;  %v1038_v33 = vsel %vm510_vm0, %v1022_v43, %v1023_v21 }
 0x17f   :  { %v3654_v62 = vadd.f32 %v945_v59, %v3002_v0  ;;  %v1054_v55 = vsel %vm4376_vm4, %v1038_v33, 0.0  ;;  %v3705_v33 = vld [vmem:[%s4304_s5] sm:$0x3] }
 0x180   :  { %1101 = vrot.lane.b32.xlu1 %v3651_v3, %s2746_s19  ;;  %v1026_v12 = vrot.slane %v3651_v3, 1 }
 0x181   :  { %v2434_v0 = vpop.f32.mrb[12].mxu0  ;;  %1159 = vrot.lane.b32.xlu0 %v1055_v1, %s2747_s26  ;;  %v1025_v34 = vrot.slane %v3654_v62, 1 }
 0x182   :  { %v922_v4 = vadd.f32 %v2434_v0, %v3519_v40  ;;  %v916_v29 = vpop.f32.mrb[13].mxu0 }
 0x183   :  { %v917_v61 = vadd.f32 %v916_v29, %v3519_v40  ;;  %v1035_v21 = vsel %vm510_vm0, %v1025_v34, %v1026_v12  ;;  %v1036_v39 = vsel %vm510_vm0, %v1024_v58, %v1025_v34 }
 0x184   :  { %v948_v43 = vmax.f32 %v922_v4, 0.0  ;;  %1157 = vrot.lane.b32.xlu1 %v1054_v55, %s2747_s26  ;;  %v1057_v10 = vsel %vm4378_vm5, %v1035_v21, 0.0  ;;  %v1056_v1 = vsel %vm4380_vm6, %v1036_v39, 0.0  ;;  %v1626_v4 = vrot.slane %v3705_v33, %v3504_v24 }
 0x185   :  { %v947_v22 = vmax.f32 %v917_v61, 0.0  ;;  %1099 = vrot.lane.b32.xlu0 %v3654_v62, %s2746_s19  ;;  %v4381_v61 = vld [vmem:[#allocation5_spill] sm:$0xff] }
 0x186   :  { %v3684_v48 = vadd.f32 %v948_v43, %v3092_v46  ;;  %vm4382_vm7 = vcmp.lt.s32.totalorder %v4381_v61, 8 }
 0x187   :  { %v3687_v52 = vadd.f32 %v947_v22, %v3064_v60 }
 0x188   :  { %1105 = vrot.lane.b32.xlu1 %v3684_v48, %s2746_s19  ;;  %v1028_v46 = vrot.slane %v3684_v48, 1 }
 0x189   :  { %v2437_v50 = vpop.f32.mrb[14].mxu0  ;;  %1163 = vrot.lane.b32.xlu0 %v1057_v10, %s2747_s26  ;;  %v1027_v59 = vrot.slane %v3687_v52, 1 }
 0x18a   :  { %v932_v20 = vadd.f32 %v2437_v50, %v3519_v40  ;;  %v926_v60 = vpop.f32.mrb[15].mxu0 }
 0x18b   :  { %v927_v42 = vadd.f32 %v926_v60, %v3519_v40  ;;  %v1033_v34 = vsel %vm510_vm0, %v1027_v59, %v1028_v46  ;;  %v1034_v43 = vsel %vm510_vm0, %v1026_v12, %v1027_v59 }
 0x18c   :  { %v950_v58 = vmax.f32 %v932_v20, 0.0  ;;  %1161 = vrot.lane.b32.xlu1 %v1056_v1, %s2747_s26  ;;  %v1059_v55 = vsel %vm4382_vm7, %v1033_v34, 0.0  ;;  %v4385_v1 = vld [vmem:[#allocation6_spill] sm:$0xff] }
 0x18d   :  { %v949_v0 = vmax.f32 %v927_v42, 0.0  ;;  %1103 = vrot.lane.b32.xlu0 %v3687_v52, %s2746_s19  ;;  %vm4386_vm4 = vcmp.lt.s32.totalorder %v4385_v1, 8  ;;  %v969_v1 = vrot.slane %v3559_v32, 7 }
 0x18e   :  { %v3713_v40 = vadd.f32 %v950_v58, %v3148_v53 }
 0x18f   :  { %v3718_v29 = vadd.f32 %v949_v0, %v3120_v23  ;;  %v4383_v23 = vld [vmem:[#allocation4_spill] sm:$0xff]  ;;  %v4387_v0 = vld [vmem:[#allocation7_spill] sm:$0xff] }
 0x190   :  { %1109 = vrot.lane.b32.xlu1 %v3713_v40, %s2746_s19  ;;  %v1030_v21 = vrot.slane %v3713_v40, 1  ;;  %vm4384_vm2 = vcmp.lt.s32.totalorder %v4383_v23, 8  ;;  %vm4388_vm5 = vcmp.lt.s32.totalorder %v4387_v0, 8 }
 0x191   :  { %1167 = vrot.lane.b32.xlu0 %v1059_v55, %s2747_s26  ;;  %v2512_v22 = vpop.f32.mrb[16].mxu0  ;;  %v1029_v53 = vrot.slane %v3718_v29, 1  ;;  %v1058_v39 = vsel %vm4384_vm2, %v1034_v43, 0.0  ;;  %vm4393_vm2 = vcmp.ge.s32.totalorder %v3261_v51, 0  ;;  %v1586_v51 = vld [vmem:[%s4301_s4 + $0xa0] sm:$0xff] }
 0x192   :  { %v1705_v56 = vadd.f32 %v2512_v22, %v1626_v4  ;;  %v1699_v10 = vpop.f32.mrb[17].mxu0  ;;  %v1046_v34 = vsel %vm510_vm0, %v1030_v21, %v1015_v6 }
 0x193   :  { %v1700_v50 = vadd.f32 %v1699_v10, %v1626_v4  ;;  %v1032_v60 = vsel %vm510_vm0, %v1028_v46, %v1029_v53  ;;  %v1031_v59 = vsel %vm510_vm0, %v1029_v53, %v1030_v21  ;;  %v982_v53 = vrot.slane %v3713_v40, 7 }
 0x194   :  { %1165 = vrot.lane.b32.xlu1 %v1058_v39, %s2747_s26  ;;  %v1709_v20 = vmax.f32 %v1705_v56, 0.0  ;;  %v1060_v58 = vsel %vm4386_vm4, %v1032_v60, 0.0  ;;  %v1061_v46 = vsel %vm4388_vm5, %v1031_v59, 0.0  ;;  %v967_v21 = vrot.slane %v3540_v25, 7 }
 0x195   :  { %1107 = vrot.lane.b32.xlu0 %v3718_v29, %s2746_s19  ;;  %v1708_v12 = vmax.f32 %v1700_v50, 0.0  ;;  %vm4394_vm4 = vcmp.ge.s32.totalorder %v3272_v17, 0  ;;  %vm4395_vm5 = vcmp.ge.s32.totalorder %v3305_v47, 0 }
 0x196   :  { %v3739_v42 = vadd.f32 %v1709_v20, %v3196_v37  ;;  %v4389_v37 = vld [vmem:[#allocation8_spill] sm:$0xff]  ;;  %v998_v10 = vsel %vm429_vm14, %v982_v53, %v967_v21 }
 0x197   :  { %v3742_v36 = vadd.f32 %v1708_v12, %v3191_v28  ;;  %vm4390_vm6 = vcmp.lt.s32.totalorder %v4389_v37, 8  ;;  %v999_v39 = vsel %vm276_vm15, %v998_v10, 0.0  ;;  %v968_v12 = vrot.slane %v3536_v49, 7  ;;  %v1581_v37 = vld [vmem:[%s4301_s4 + $0x78] sm:$0xff] }
 0x198   :  { %1169 = vrot.lane.b32.xlu1 %v1060_v58, %s2747_s26  ;;  %v1719_v4 = vrot.slane %v3739_v42, 1  ;;  %v1062_v61 = vsel %vm4390_vm6, %v1046_v34, 0.0  ;;  %vm4396_vm6 = vcmp.ge.s32.totalorder %v3316_v31, 0 }
 0x199   :  { %1171 = vrot.lane.b32.xlu0 %v1061_v46, %s2747_s26  ;;  %v1718_v28 = vrot.slane %v3742_v36, 1  ;;  %v997_v0 = vsel %vm429_vm14, %v967_v21, %v968_v12  ;;  %v996_v34 = vsel %vm429_vm14, %v968_v12, %v969_v1 }
 0x19b   :  { %v1720_v55 = vsel %vm510_vm0, %v1718_v28, %v1719_v4  ;;  %v1721_v43 = vsel %vm510_vm0, %v1719_v4, %v1718_v28  ;;  %v1580_v28 = vld [vmem:[%s4301_s4 + $0x70] sm:$0xff] }
 0x19c   :  { %1173 = vrot.lane.b32.xlu1 %v1062_v61, %s2747_s26  ;;  %v1722_v6 = vsel %vm356_vm1, %v1720_v55, 0.0  ;;  %v1723_v22 = vsel %vm357_vm3, %v1721_v43, 0.0  ;;  %v1000_v61 = vsel %vm277_vm11, %v997_v0, 0.0  ;;  %v4391_v43 = vld [vmem:[#allocation9_spill] sm:$0xff] }
 0x19d   :  { %1726 = vrot.lane.b32.xlu0 %v3742_v36, %s2746_s19  ;;  %vm4392_vm7 = vcmp.ge.s32.totalorder %v4391_v43, 0 }
 0x1a0   :  { %1728 = vrot.lane.b32.xlu1 %v3739_v42, %s2746_s19 }
 0x1a1   :  { %1734 = vrot.lane.b32.xlu0 %v1722_v6, %s2747_s26  ;;  %v970_v6 = vrot.slane %v3556_v44, 7 }
 0x1a4   :  { %1736 = vrot.lane.b32.xlu1 %v1723_v22, %s2747_s26  ;;  %v1001_v22 = vsel %vm4392_vm7, %v996_v34, 0.0  ;;  %vm4397_vm7 = vcmp.ge.s32.totalorder %v3345_v18, 0 }
 0x1ce   :  { %v1082_v23 = vpop.permute.xlu1 %1081 }
 0x1cf   :  { %v1080_v56 = vpop.permute.xlu0 %1079  ;;  %v1192_v55 = vsel %vm703_vm13, %v1000_v61, %v1082_v23  ;;  %v1583_v23 = vld [vmem:[%s4301_s4 + $0x88] sm:$0xff]  ;;  %v1585_v61 = vld [vmem:[%s4301_s4 + $0x98] sm:$0xff] }
 0x1d0   :  { %v1191_v50 = vsel %vm703_vm13, %v999_v39, %v1080_v56  ;;  %v2635_v56 = vpack.c.bf16 %v1581_v37, %v1580_v28  ;;  %v971_v39 = vrot.slane %v3582_v13, 7 }
 0x1d2   :  { %v1086_v59 = vpop.permute.xlu1 %1085  ;;  %v994_v28 = vsel %vm429_vm14, %v970_v6, %v971_v39 }
 0x1d3   :  { %v1144_v20 = vpop.permute.xlu0 %1143 }
 0x1d4   :  { %v1207_v60 = vsel %vm720_vm10, %v1191_v50, %v1144_v20 }
 0x1d5   :  { %2462 = vmatprep.mubr.msk.f32.mxu1 %vm741_vm8, %v1207_v60  ;;  %v1582_v60 = vld [vmem:[%s4301_s4 + $0x80] sm:$0xff] }
 0x1d6   :  { %v2639_v34 = vpack.c.bf16 %v1583_v23, %v1582_v60 }
 0x1d7   :  { %v1084_v58 = vpop.permute.xlu0 %1083 }
 0x1d8   :  { %v1193_v10 = vsel %vm703_vm13, %v1001_v22, %v1084_v58  ;;  %v995_v58 = vsel %vm429_vm14, %v969_v1, %v970_v6  ;;  %v1003_v6 = vsel %vm4394_vm4, %v994_v28, 0.0  ;;  %v1588_v28 = vld [vmem:[%s4301_s4 + $0xb0] sm:$0xff]  ;;  %vm4399_vm4 = vcmp.ge.s32.totalorder %v3377_v7, 0 }
 0x1da   :  { %v1090_v46 = vpop.permute.xlu1 %1089 }
 0x1db   :  { %v1148_v4 = vpop.permute.xlu0 %1147 }
 0x1dc   :  { %v1209_v12 = vsel %vm720_vm10, %v1193_v10, %v1148_v4  ;;  %v1584_v4 = vld [vmem:[%s4301_s4 + $0x90] sm:$0xff]  ;;  %v973_v10 = vrot.slane %v3606_v63, 7 }
 0x1dd   :  { %v2643_v22 = vpack.c.bf16 %v1585_v61, %v1584_v4  ;;  %v974_v4 = vrot.slane %v3603_v2, 7 }
 0x1de   :  { %v1146_v21 = vpop.permute.xlu1 %1145 }
 0x1df   :  { %v1208_v50 = vsel %vm720_vm10, %v1192_v55, %v1146_v21  ;;  %v1088_v20 = vpop.permute.xlu0 %1087  ;;  %v972_v55 = vrot.slane %v3579_v19, 7  ;;  %v991_v31 = vsel %vm429_vm14, %v973_v10, %v974_v4 }
 0x1e0   :  { %2463 = vmatmul.mubr.msk.f32.vlgmr.msra.gmra.mrb[0].mxu1 %vm741_vm8, %v1208_v50  ;;  %v1195_v21 = vsel %vm703_vm13, %v1003_v6, %v1088_v20  ;;  %v975_v6 = vrot.slane %v3630_v9, 7 }
 0x1e1   :  { %2465 = vmatprep.mubr.msk.f32.mxu1 %vm741_vm8, %v1209_v12  ;;  %2634 = vmatpush3.bf16.msra.mxu1 %v3668_v45  ;;  %v1002_v45 = vsel %vm4393_vm2, %v995_v58, 0.0  ;;  %v992_v12 = vsel %vm429_vm14, %v972_v55, %v973_v10  ;;  %vm4398_vm2 = vcmp.ge.s32.totalorder %v3354_v30, 0 }
 0x1e2   :  { %v1094_v0 = vpop.permute.xlu1 %1093  ;;  %2636 = vmatprep.subr.bf16.mxu1 %v2635_v56  ;;  %v1194_v1 = vsel %vm703_vm13, %v1002_v45, %v1086_v59  ;;  %v1587_v59 = vld [vmem:[%s4301_s4 + $0xa8] sm:$0xff]  ;;  %v1005_v61 = vsel %vm4396_vm6, %v992_v12, 0.0  ;;  %vm4401_vm6 = vcmp.ge.s32.totalorder %v3403_v35, 0  ;;  %v1712_v35 = vrot.slane %v3742_v36, 7 }
 0x1e3   :  { %v1152_v37 = vpop.permute.xlu0 %1151  ;;  %v2647_v23 = vpack.c.bf16 %v1587_v59, %v1586_v51  ;;  %v976_v59 = vrot.slane %v3627_v41, 7 }
 0x1e4   :  { %v1211_v17 = vsel %vm720_vm10, %v1195_v21, %v1152_v37  ;;  %v1589_v37 = vld [vmem:[%s4301_s4 + $0xb8] sm:$0xff] }
 0x1e5   :  { %2638 = vmatpush3.bf16.msra.mxu1 %v2635_v56  ;;  %v993_v56 = vsel %vm429_vm14, %v971_v39, %v972_v55  ;;  %v989_v18 = vsel %vm429_vm14, %v975_v6, %v976_v59 }
 0x1e6   :  { %v1150_v43 = vpop.permute.xlu1 %1149  ;;  %2640 = vmatprep.subr.bf16.mxu1 %v2639_v34 }
 0x1e7   :  { %v1210_v50 = vsel %vm720_vm10, %v1194_v1, %v1150_v43  ;;  %v1092_v60 = vpop.permute.xlu0 %1091  ;;  %v2651_v1 = vpack.c.bf16 %v1589_v37, %v1588_v28 }
 0x1e8   :  { %2466 = vmatmul.mubr.msk.f32.gmra.mrb[2].mxu1 %vm741_vm8, %v1210_v50  ;;  %v1197_v55 = vsel %vm703_vm13, %v1005_v61, %v1092_v60  ;;  %v1006_v60 = vsel %vm4397_vm7, %v991_v31, 0.0  ;;  %vm4402_vm7 = vcmp.ge.s32.totalorder %v3412_v27, 0 }
 0x1e9   :  { %2468 = vmatprep.mubr.msk.f32.mxu1 %vm741_vm8, %v1211_v17  ;;  %2642 = vmatpush3.bf16.msra.mxu1 %v2639_v34  ;;  %v1004_v34 = vsel %vm4395_vm5, %v993_v56, 0.0  ;;  %v1198_v51 = vsel %vm703_vm13, %v1006_v60, %v1094_v0  ;;  %vm4400_vm5 = vcmp.ge.s32.totalorder %v3386_v16, 0  ;;  %v980_v16 = vrot.slane %v3684_v48, 7 }
 0x1ea   :  { %v1098_v20 = vpop.permute.xlu1 %1097  ;;  %2644 = vmatprep.subr.bf16.mxu1 %v2643_v22  ;;  %v1196_v39 = vsel %vm703_vm13, %v1004_v34, %v1090_v46  ;;  %v1008_v34 = vsel %vm4399_vm4, %v989_v18, 0.0  ;;  %vm1855_vm4 = vcmask 1044484  }
 0x1eb   :  { %v1156_v58 = vpop.permute.xlu0 %1155 }
 0x1ec   :  { %v1213_v47 = vsel %vm720_vm10, %v1197_v55, %v1156_v58  ;;  %v979_v55 = vrot.slane %v3687_v52, 7 }
 0x1ed   :  { %2646 = vmatpush3.bf16.msra.mxu1 %v2643_v22  ;;  %v990_v22 = vsel %vm429_vm14, %v974_v4, %v975_v6  ;;  %v978_v4 = vrot.slane %v3651_v3, 7 }
 0x1ee   :  { %v1154_v45 = vpop.permute.xlu1 %1153  ;;  %2648 = vmatprep.subr.bf16.mxu1 %v2647_v23  ;;  %v1007_v17 = vsel %vm4398_vm2, %v990_v22, 0.0  ;;  %vm4403_vm2 = vcmp.ge.s32.totalorder %v3429_v8, 0 }
 0x1ef   :  { %v1212_v43 = vsel %vm720_vm10, %v1196_v39, %v1154_v45  ;;  %v1096_v21 = vpop.permute.xlu0 %1095  ;;  %v1200_v39 = vsel %vm703_vm13, %v1008_v34, %v1098_v20  ;;  %v981_v20 = vrot.slane %v3718_v29, 7  ;;  %v986_v31 = vsel %vm429_vm14, %v978_v4, %v979_v55 }
 0x1f0   :  { %2469 = vmatmul.mubr.msk.f32.gmra.mrb[4].mxu1 %vm741_vm8, %v1212_v43  ;;  %v1199_v10 = vsel %vm703_vm13, %v1007_v17, %v1096_v21 }
 0x1f1   :  { %2471 = vmatprep.mubr.msk.f32.mxu1 %vm741_vm8, %v1213_v47  ;;  %2650 = vmatpush3.bf16.msra.mxu1 %v2647_v23  ;;  %v977_v23 = vrot.slane %v3654_v62, 7  ;;  %v983_v18 = vsel %vm429_vm14, %v981_v20, %v982_v53 }
 0x1f2   :  { %v1102_v46 = vpop.permute.xlu1 %1101  ;;  %2652 = vmatprep.subr.bf16.mxu1 %v2651_v1 }
 0x1f3   :  { %v1160_v50 = vpop.permute.xlu0 %1159  ;;  %v988_v30 = vsel %vm429_vm14, %v976_v59, %v977_v23  ;;  %v987_v7 = vsel %vm429_vm14, %v977_v23, %v978_v4  ;;  %v1011_v59 = vsel %vm4402_vm7, %v986_v31, 0.0  ;;  %vm1861_vm7 = vcmask 1047559  }
 0x1f4   :  { %v1215_v28 = vsel %vm720_vm10, %v1199_v10, %v1160_v50  ;;  %v1009_v61 = vsel %vm4400_vm5, %v988_v30, 0.0  ;;  %v1010_v50 = vsel %vm4401_vm6, %v987_v7, 0.0  ;;  %vm1857_vm5 = vcmask 1045509  }
 0x1f5   :  { %2654 = vmatpush3.bf16.msra.mxu1 %v2651_v1  ;;  %v1202_v60 = vsel %vm703_vm13, %v1010_v50, %v1102_v46  ;;  %vm1859_vm6 = vcmask 1046534  }
 0x1f6   :  { %v1158_v56 = vpop.permute.xlu1 %1157 }
 0x1f7   :  { %v1214_v12 = vsel %vm720_vm10, %v1198_v51, %v1158_v56  ;;  %v1100_v58 = vpop.permute.xlu0 %1099  ;;  %v985_v51 = vsel %vm429_vm14, %v979_v55, %v980_v16  ;;  %v984_v56 = vsel %vm429_vm14, %v980_v16, %v981_v20 }
 0x1f8   :  { %2472 = vmatmul.mubr.msk.f32.gmra.mrb[6].mxu1 %vm741_vm8, %v1214_v12  ;;  %v1201_v1 = vsel %vm703_vm13, %v1009_v61, %v1100_v58  ;;  %v1713_v58 = vrot.slane %v3739_v42, 7  ;;  %v1012_v27 = vsel %vm4403_vm2, %v985_v51, 0.0  ;;  %v1013_v30 = vsel %vm290_vm12, %v984_v56, 0.0 }
 0x1f9   :  { %2474 = vmatprep.mubr.msk.f32.mxu1 %vm741_vm8, %v1215_v28  ;;  %vm1853_vm12 = vcmask 1043459  }
 0x1fa   :  { %v1106_v0 = vpop.permute.xlu1 %1105  ;;  %v1715_v8 = vsel %vm429_vm14, %v1713_v58, %v1712_v35 }
 0x1fb   :  { %v1164_v37 = vpop.permute.xlu0 %1163  ;;  %v1204_v28 = vsel %vm703_vm13, %v1012_v27, %v1106_v0  ;;  %v1014_v0 = vsel %vm291_vm9, %v983_v18, 0.0  ;;  %vm1851_vm9 = vcmask 1042434  }
 0x1fc   :  { %v1217_v21 = vsel %vm720_vm10, %v1201_v1, %v1164_v37  ;;  %v1714_v1 = vsel %vm429_vm14, %v1712_v35, %v1713_v58 }
 0x1fd   :  { %v1717_v11 = vsel %vm277_vm11, %v1714_v1, 0.0 }
 0x1fe   :  { %v1162_v45 = vpop.permute.xlu1 %1161 }
 0x1ff   :  { %v1216_v6 = vsel %vm720_vm10, %v1200_v39, %v1162_v45  ;;  %v1104_v43 = vpop.permute.xlu0 %1103  ;;  %v1716_v45 = vsel %vm276_vm15, %v1715_v8, 0.0 }
 0x200   :  { %2475 = vmatmul.mubr.msk.f32.gmra.mrb[8].mxu1 %vm741_vm8, %v1216_v6  ;;  %v1203_v10 = vsel %vm703_vm13, %v1011_v59, %v1104_v43 }
 0x201   :  { %2477 = vmatprep.mubr.msk.f32.mxu1 %vm741_vm8, %v1217_v21 }
 0x202   :  { %v1110_v47 = vpop.permute.xlu1 %1109 }
 0x203   :  { %v1168_v22 = vpop.permute.xlu0 %1167  ;;  %v1206_v57 = vsel %vm703_vm13, %v1014_v0, %v1110_v47 }
 0x204   :  { %v1219_v46 = vsel %vm720_vm10, %v1203_v10, %v1168_v22  ;;  %v3953_v22 = vsub.s32 1, %v2828_v5  ;;  %v2153_v5 = vld [vmem:[%s4307_s8 + $0x10] sm:$0xff] }
 0x206   :  { %v1166_v17 = vpop.permute.xlu1 %1165  ;;  %v3957_v50 = vrot.slane %v3515_v38, %v3953_v22 }
 0x207   :  { %v1218_v23 = vsel %vm720_vm10, %v1202_v60, %v1166_v17  ;;  %v1108_v12 = vpop.permute.xlu0 %1107 }
 0x208   :  { %2478 = vmatmul.mubr.msk.f32.gmra.mrb[10].mxu1 %vm741_vm8, %v1218_v23  ;;  %v1205_v34 = vsel %vm703_vm13, %v1013_v30, %v1108_v12 }
 0x209   :  { %2480 = vmatprep.mubr.msk.f32.mxu1 %vm741_vm8, %v1219_v46 }
 0x20a   :  { %v1170_v37 = vpop.permute.xlu1 %1169 }
 0x20b   :  { %v1220_v39 = vsel %vm720_vm10, %v1204_v28, %v1170_v37  ;;  %v1172_v4 = vpop.permute.xlu0 %1171 }
 0x20c   :  { %v1221_v61 = vsel %vm720_vm10, %v1205_v34, %v1172_v4  ;;  %2481 = vmatmul.mubr.msk.f32.gmra.mrb[12].mxu1 %vm741_vm8, %v1220_v39 }
 0x20d   :  { %2483 = vmatprep.mubr.msk.f32.mxu1 %vm741_vm8, %v1221_v61 }
 0x20e   :  { %v1174_v53 = vpop.permute.xlu1 %1173 }
 0x20f   :  { %v1222_v55 = vsel %vm720_vm10, %v1206_v57, %v1174_v53  ;;  %v1727_v6 = vpop.permute.xlu0 %1726 }
 0x210   :  { %2484 = vmatmul.mubr.msk.f32.gmra.mrb[14].mxu1 %vm741_vm8, %v1222_v55  ;;  %v1740_v43 = vsel %vm703_vm13, %v1716_v45, %v1727_v6 }
 0x212   :  { %v1729_v21 = vpop.permute.xlu1 %1728 }
 0x213   :  { %v1735_v7 = vpop.permute.xlu0 %1734  ;;  %v1741_v16 = vsel %vm703_vm13, %v1717_v11, %v1729_v21 }
 0x214   :  { %v1742_v20 = vsel %vm720_vm10, %v1740_v43, %v1735_v7 }
 0x215   :  { %2537 = vmatprep.mubr.msk.f32.mxu1 %vm741_vm8, %v1742_v20 }
 0x216   :  { %v1737_v47 = vpop.permute.xlu1 %1736 }
 0x217   :  { %v1743_v31 = vsel %vm720_vm10, %v1741_v16, %v1737_v47 }
 0x218   :  { %2538 = vmatmul.mubr.msk.f32.vlgmr.msra.gmra.mrb[16].mxu1 %vm741_vm8, %v1743_v31  ;;  %vm1849_vm8 = vcmask 1041409  }
 0x2b3   :  { %v2464_v60 = vpop.f32.mrb[0].mxu1 }
 0x2b4   :  { %v1347_v51 = vadd.f32 %v2464_v60, %v3957_v50  ;;  %v1341_v59 = vpop.f32.mrb[1].mxu1 }
 0x2b5   :  { %v1342_v17 = vadd.f32 %v1341_v59, %v3957_v50 }
 0x2b6   :  { %v1421_v56 = vmax.f32 %v1347_v51, 0.0 }
 0x2b7   :  { %v1420_v10 = vmax.f32 %v1342_v17, 0.0 }
 0x2b8   :  { %v1437_v23 = vadd.f32 %v1421_v56, %v3536_v49 }
 0x2b9   :  { %v1436_v12 = vadd.f32 %v1420_v10, %v3540_v25 }
 0x2ba   :  { %v1459_v35 = vsel %vm703_vm13, %v1437_v23, -inf }
 0x2bb   :  { %v1460_v58 = vrot.slane %v1459_v35, 4  ;;  %v1452_v46 = vsel %vm703_vm13, %v1436_v12, -inf  ;;  %v2467_v27 = vpop.f32.mrb[2].mxu1 }
 0x2bc   :  { %v1453_v38 = vrot.slane %v1452_v46, 4  ;;  %v1357_v28 = vadd.f32 %v2467_v27, %v3957_v50  ;;  %v1351_v18 = vpop.f32.mrb[3].mxu1 }
 0x2bd   :  { %v1461_v30 = vmax.f32 %v1459_v35, %v1460_v58  ;;  %v1352_v37 = vadd.f32 %v1351_v18, %v3957_v50 }
 0x2be   :  { %v1454_v34 = vmax.f32 %v1452_v46, %v1453_v38  ;;  %v1423_v39 = vmax.f32 %v1357_v28, 0.0 }
 0x2bf   :  { %v1462_v4 = vrot.slane %v1461_v30, 2  ;;  %v1422_v8 = vmax.f32 %v1352_v37, 0.0 }
 0x2c0   :  { %v1455_v49 = vrot.slane %v1454_v34, 2  ;;  %v1439_v25 = vadd.f32 %v1423_v39, %v3556_v44 }
 0x2c1   :  { %v1463_v61 = vmax.f32 %v1461_v30, %v1462_v4  ;;  %v1438_v0 = vadd.f32 %v1422_v8, %v3559_v32 }
 0x2c2   :  { %v1456_v57 = vmax.f32 %v1454_v34, %v1455_v49  ;;  %v1473_v53 = vsel %vm703_vm13, %v1439_v25, -inf }
 0x2c3   :  { %v1464_v45 = vrot.slane %v1463_v61, 1  ;;  %v1474_v1 = vrot.slane %v1473_v53, 4  ;;  %v1466_v55 = vsel %vm703_vm13, %v1438_v0, -inf  ;;  %v2470_v6 = vpop.f32.mrb[4].mxu1 }
 0x2c4   :  { %v1457_v43 = vrot.slane %v1456_v57, 1  ;;  %v1467_v11 = vrot.slane %v1466_v55, 4  ;;  %v1367_v21 = vadd.f32 %v2470_v6, %v3957_v50  ;;  %v1361_v7 = vpop.f32.mrb[5].mxu1 }
 0x2c5   :  { %v1465_v16 = vmax.f32 %v1463_v61, %v1464_v45  ;;  %v1475_v20 = vmax.f32 %v1473_v53, %v1474_v1  ;;  %v1362_v44 = vadd.f32 %v1361_v7, %v3957_v50 }
 0x2c6   :  { %v1458_v47 = vmax.f32 %v1456_v57, %v1457_v43  ;;  %v1468_v32 = vmax.f32 %v1466_v55, %v1467_v11  ;;  %v1425_v31 = vmax.f32 %v1367_v21, 0.0 }
 0x2c7   :  { %v1476_v60 = vrot.slane %v1475_v20, 2  ;;  %v1424_v51 = vmax.f32 %v1362_v44, 0.0 }
 0x2c8   :  { %v1850_v59 = vsel %vm1849_vm8, %v1465_v16, %v1458_v47  ;;  %v1469_v17 = vrot.slane %v1468_v32, 2  ;;  %v1441_v56 = vadd.f32 %v1425_v31, %v3579_v19 }
 0x2c9   :  { %v1477_v10 = vmax.f32 %v1475_v20, %v1476_v60  ;;  %v1440_v23 = vadd.f32 %v1424_v51, %v3582_v13 }
 0x2ca   :  { %v1470_v12 = vmax.f32 %v1468_v32, %v1469_v17  ;;  %v1487_v35 = vsel %vm703_vm13, %v1441_v56, -inf }
 0x2cb   :  { %v1478_v58 = vrot.slane %v1477_v10, 1  ;;  %v1488_v46 = vrot.slane %v1487_v35, 4  ;;  %v1480_v27 = vsel %vm703_vm13, %v1440_v23, -inf  ;;  %v2473_v38 = vpop.f32.mrb[6].mxu1 }
 0x2cc   :  { %v1471_v28 = vrot.slane %v1470_v12, 1  ;;  %v1481_v18 = vrot.slane %v1480_v27, 4  ;;  %v1377_v30 = vadd.f32 %v2473_v38, %v3957_v50  ;;  %v1371_v37 = vpop.f32.mrb[7].mxu1 }
 0x2cd   :  { %v1489_v34 = vmax.f32 %v1487_v35, %v1488_v46  ;;  %v1372_v39 = vadd.f32 %v1371_v37, %v3957_v50  ;;  %v1479_v8 = vmax.f32 %v1477_v10, %v1478_v58 }
 0x2ce   :  { %v1472_v19 = vmax.f32 %v1470_v12, %v1471_v28  ;;  %v1482_v4 = vmax.f32 %v1480_v27, %v1481_v18  ;;  %v1427_v13 = vmax.f32 %v1377_v30, 0.0 }
 0x2cf   :  { %v1490_v49 = vrot.slane %v1489_v34, 2  ;;  %v1426_v25 = vmax.f32 %v1372_v39, 0.0 }
 0x2d0   :  { %v1483_v61 = vrot.slane %v1482_v4, 2  ;;  %v1443_v0 = vadd.f32 %v1427_v13, %v3603_v2  ;;  %v1852_v57 = vsel %vm1851_vm9, %v1472_v19, %v1850_v59 }
 0x2d1   :  { %v1491_v53 = vmax.f32 %v1489_v34, %v1490_v49  ;;  %v1442_v45 = vadd.f32 %v1426_v25, %v3606_v63  ;;  %v1854_v1 = vsel %vm1853_vm12, %v1479_v8, %v1852_v57 }
 0x2d2   :  { %v1484_v55 = vmax.f32 %v1482_v4, %v1483_v61  ;;  %v1501_v6 = vsel %vm703_vm13, %v1443_v0, -inf }
 0x2d3   :  { %v1492_v43 = vrot.slane %v1491_v53, 1  ;;  %v1502_v11 = vrot.slane %v1501_v6, 4  ;;  %v1494_v21 = vsel %vm703_vm13, %v1442_v45, -inf  ;;  %v2476_v7 = vpop.f32.mrb[8].mxu1 }
 0x2d4   :  { %v1485_v16 = vrot.slane %v1484_v55, 1  ;;  %v1495_v20 = vrot.slane %v1494_v21, 4  ;;  %v1387_v44 = vadd.f32 %v2476_v7, %v3957_v50  ;;  %v1381_v2 = vpop.f32.mrb[9].mxu1 }
 0x2d5   :  { %v1503_v47 = vmax.f32 %v1501_v6, %v1502_v11  ;;  %v1382_v32 = vadd.f32 %v1381_v2, %v3957_v50  ;;  %v1493_v51 = vmax.f32 %v1491_v53, %v1492_v43 }
 0x2d6   :  { %v1486_v63 = vmax.f32 %v1484_v55, %v1485_v16  ;;  %v1496_v31 = vmax.f32 %v1494_v21, %v1495_v20  ;;  %v1429_v60 = vmax.f32 %v1387_v44, 0.0 }
 0x2d7   :  { %v1504_v59 = vrot.slane %v1503_v47, 2  ;;  %v1428_v17 = vmax.f32 %v1382_v32, 0.0 }
 0x2d8   :  { %v1497_v56 = vrot.slane %v1496_v31, 2  ;;  %v1445_v10 = vadd.f32 %v1429_v60, %v3627_v41  ;;  %v1856_v23 = vsel %vm1855_vm4, %v1486_v63, %v1854_v1 }
 0x2d9   :  { %v1505_v12 = vmax.f32 %v1503_v47, %v1504_v59  ;;  %v1444_v35 = vadd.f32 %v1428_v17, %v3630_v9  ;;  %v1858_v58 = vsel %vm1857_vm5, %v1493_v51, %v1856_v23 }
 0x2da   :  { %v1498_v46 = vmax.f32 %v1496_v31, %v1497_v56  ;;  %v1515_v27 = vsel %vm703_vm13, %v1445_v10, -inf }
 0x2db   :  { %v1516_v38 = vrot.slane %v1515_v27, 4  ;;  %v1508_v28 = vsel %vm703_vm13, %v1444_v35, -inf  ;;  %v2479_v18 = vpop.f32.mrb[10].mxu1  ;;  %v1506_v30 = vrot.slane %v1505_v12, 1 }
 0x2dc   :  { %v1499_v37 = vrot.slane %v1498_v46, 1  ;;  %v1509_v34 = vrot.slane %v1508_v28, 4  ;;  %v1397_v39 = vadd.f32 %v2479_v18, %v3957_v50  ;;  %v1391_v41 = vpop.f32.mrb[11].mxu1 }
 0x2dd   :  { %v1517_v19 = vmax.f32 %v1515_v27, %v1516_v38  ;;  %v1392_v4 = vadd.f32 %v1391_v41, %v3957_v50  ;;  %v1507_v0 = vmax.f32 %v1505_v12, %v1506_v30 }
 0x2de   :  { %v1510_v9 = vmax.f32 %v1508_v28, %v1509_v34  ;;  %v1431_v13 = vmax.f32 %v1397_v39, 0.0  ;;  %v1500_v8 = vmax.f32 %v1498_v46, %v1499_v37 }
 0x2df   :  { %v1518_v49 = vrot.slane %v1517_v19, 2  ;;  %v1430_v25 = vmax.f32 %v1392_v4, 0.0  ;;  %v2482_v61 = vpop.f32.mrb[12].mxu1 }
 0x2e0   :  { %v1511_v57 = vrot.slane %v1510_v9, 2  ;;  %v1447_v53 = vadd.f32 %v1431_v13, %v3651_v3  ;;  %v1407_v45 = vadd.f32 %v2482_v61, %v3957_v50  ;;  %v1401_v1 = vpop.f32.mrb[13].mxu1  ;;  %v1860_v55 = vsel %vm1859_vm6, %v1500_v8, %v1858_v58 }
 0x2e1   :  { %v1519_v6 = vmax.f32 %v1517_v19, %v1518_v49  ;;  %v1446_v43 = vadd.f32 %v1430_v25, %v3654_v62  ;;  %v1402_v11 = vadd.f32 %v1401_v1, %v3957_v50  ;;  %v1862_v21 = vsel %vm1861_vm7, %v1507_v0, %v1860_v55 }
 0x2e2   :  { %v1512_v7 = vmax.f32 %v1510_v9, %v1511_v57  ;;  %v1529_v16 = vsel %vm703_vm13, %v1447_v53, -inf  ;;  %v1433_v20 = vmax.f32 %v1407_v45, 0.0  ;;  %1870 = vrot.lane.b32.xlu0 %v1862_v21, %s2746_s19 }
 0x2e3   :  { %v1520_v44 = vrot.slane %v1519_v6, 1  ;;  %v1530_v3 = vrot.slane %v1529_v16, 4  ;;  %v1522_v2 = vsel %vm703_vm13, %v1446_v43, -inf  ;;  %v1432_v47 = vmax.f32 %v1402_v11, 0.0  ;;  %v2485_v32 = vpop.f32.mrb[14].mxu1 }
 0x2e4   :  { %v1513_v63 = vrot.slane %v1512_v7, 1  ;;  %v1523_v31 = vrot.slane %v1522_v2, 4  ;;  %v1449_v62 = vadd.f32 %v1433_v20, %v3684_v48  ;;  %v1417_v60 = vadd.f32 %v2485_v32, %v3957_v50  ;;  %v1411_v51 = vpop.f32.mrb[15].mxu1 }
 0x2e5   :  { %v1521_v59 = vmax.f32 %v1519_v6, %v1520_v44  ;;  %v1531_v17 = vmax.f32 %v1529_v16, %v1530_v3  ;;  %v1448_v56 = vadd.f32 %v1432_v47, %v3687_v52  ;;  %v1412_v10 = vadd.f32 %v1411_v51, %v3957_v50 }
 0x2e6   :  { %v1514_v23 = vmax.f32 %v1512_v7, %v1513_v63  ;;  %v1524_v12 = vmax.f32 %v1522_v2, %v1523_v31  ;;  %v1543_v35 = vsel %vm703_vm13, %v1449_v62, -inf  ;;  %v1435_v58 = vmax.f32 %v1417_v60, 0.0  ;;  %v1878_v63 = vld [vmem:[%s4305_s6] sm:$0xff]  ;;  %v1879_v31 = vld [vmem:[%s4305_s6 + $0x8] sm:$0xff]  ;;  %v1880_v62 = vld [vmem:[%s4305_s6 + $0x10] sm:$0xff] }
 0x2e7   :  { %v1532_v46 = vrot.slane %v1531_v17, 2  ;;  %v1544_v27 = vrot.slane %v1543_v35, 4  ;;  %v1536_v38 = vsel %vm703_vm13, %v1448_v56, -inf  ;;  %v1434_v28 = vmax.f32 %v1412_v10, 0.0 }
 0x2e8   :  { %v1863_v48 = vsel %vm1849_vm8, %v1521_v59, %v1514_v23  ;;  %v1525_v18 = vrot.slane %v1524_v12, 2  ;;  %v1537_v30 = vrot.slane %v1536_v38, 4  ;;  %v1451_v37 = vadd.f32 %v1435_v58, %v3713_v40  ;;  %v1883_v58 = vld [vmem:[%s4305_s6 + $0x28] sm:$0xff] }
 0x2e9   :  { %v1533_v34 = vmax.f32 %v1531_v17, %v1532_v46  ;;  %v1545_v52 = vmax.f32 %v1543_v35, %v1544_v27  ;;  %v1450_v50 = vadd.f32 %v1434_v28, %v3718_v29  ;;  %v2748_v32 = vmov 0.0|0.0   ;;  %v1881_v17 = vld [vmem:[%s4305_s6 + $0x18] sm:$0xff]  ;;  %v1882_v35 = vld [vmem:[%s4305_s6 + $0x20] sm:$0xff]  ;;  %v1884_v28 = vld [vmem:[%s4305_s6 + $0x30] sm:$0xff] }
 0x2ea   :  { %v1526_v39 = vmax.f32 %v1524_v12, %v1525_v18  ;;  %v1538_v41 = vmax.f32 %v1536_v38, %v1537_v30  ;;  %v1557_v19 = vsel %vm703_vm13, %v1451_v37, -inf  ;;  %2655 = vmatprep.subr.bf16.mxu0 %v2748_v32  ;;  %2691 = vmatprep.subr.bf16.mxu1 %v2748_v32  ;;  %v2656_v59 = vpack.c.bf16 %v1879_v31, %v1878_v63  ;;  %v1886_v30 = vld [vmem:[%s4305_s6 + $0x40] sm:$0xff]  ;;  %v1887_v37 = vld [vmem:[%s4305_s6 + $0x48] sm:$0xff] }
 0x2eb   :  { %v1534_v4 = vrot.slane %v1533_v34, 1  ;;  %v1546_v9 = vrot.slane %v1545_v52, 2  ;;  %v1558_v13 = vrot.slane %v1557_v19, 4  ;;  %v1550_v8 = vsel %vm703_vm13, %v1450_v50, -inf  ;;  %v4016_v49 = vpop.f32.mrb[16].mxu1  ;;  %v1889_v50 = vld [vmem:[%s4305_s6 + $0x58] sm:$0xff] }
 0x2ec   :  { %v1527_v25 = vrot.slane %v1526_v39, 1  ;;  %v1539_v61 = vrot.slane %v1538_v41, 2  ;;  %v1551_v0 = vrot.slane %v1550_v8, 4  ;;  %v4018_v57 = vpop.f32.mrb[17].mxu1  ;;  %2657 = vmatpush1.bf16.msra.mxu0 %v2656_v59  ;;  %v2659_v23 = vpack.c.bf16 %v1881_v17, %v1880_v62 }
 0x2ed   :  { %v1547_v40 = vmax.f32 %v1545_v52, %v1546_v9  ;;  %v1559_v53 = vmax.f32 %v1557_v19, %v1558_v13  ;;  %v1535_v55 = vmax.f32 %v1533_v34, %v1534_v4  ;;  %2658 = vmatprep.subr.bf16.mxu0 %v2748_v32  ;;  %v2662_v38 = vpack.c.bf16 %v1883_v58, %v1882_v35  ;;  %v1888_v52 = vld [vmem:[%s4305_s6 + $0x50] sm:$0xff]  ;;  %v1891_v19 = vld [vmem:[%s4305_s6 + $0x68] sm:$0xff]  ;;  %v1893_v13 = vld [vmem:[%s4305_s6 + $0x78] sm:$0xff] }
 0x2ee   :  { %v1528_v45 = vmax.f32 %v1526_v39, %v1527_v25  ;;  %v1540_v29 = vmax.f32 %v1538_v41, %v1539_v61  ;;  %v1552_v1 = vmax.f32 %v1550_v8, %v1551_v0  ;;  %v2668_v34 = vpack.c.bf16 %v1887_v37, %v1886_v30  ;;  %v1890_v41 = vld [vmem:[%s4305_s6 + $0x60] sm:$0xff]  ;;  %v1892_v9 = vld [vmem:[%s4305_s6 + $0x70] sm:$0xff]  ;;  %v1895_v61 = vld [vmem:[%s4305_s6 + $0x88] sm:$0xff] }
 0x2ef   :  { %v1548_v6 = vrot.slane %v1547_v40, 1  ;;  %v1560_v43 = vrot.slane %v1559_v53, 2  ;;  %v2671_v39 = vpack.c.bf16 %v1889_v50, %v1888_v52  ;;  %v2674_v4 = vpack.c.bf16 %v1891_v19, %v1890_v41  ;;  %v1894_v25 = vld [vmem:[%s4305_s6 + $0x80] sm:$0xff]  ;;  %v1908_v50 = vld [vmem:[%s4305_s6 + $0xf0] sm:$0xff] }
 0x2f0   :  { %v1541_v11 = vrot.slane %v1540_v29, 1  ;;  %v1553_v21 = vrot.slane %v1552_v1, 2  ;;  %v1864_v7 = vsel %vm1851_vm9, %v1528_v45, %v1863_v48  ;;  %2660 = vmatpush1.bf16.msra.mxu0 %v2659_v23  ;;  %v1885_v48 = vld [vmem:[%s4305_s6 + $0x38] sm:$0xff]  ;;  %v2677_v8 = vpack.c.bf16 %v1893_v13, %v1892_v9  ;;  %v1906_v37 = vld [vmem:[%s4305_s6 + $0xe0] sm:$0xff]  ;;  %v1912_v13 = vld [vmem:[%s4305_s6 + $0x110] sm:$0xff] }
 0x2f1   :  { %v1561_v16 = vmax.f32 %v1559_v53, %v1560_v43  ;;  %v1865_v20 = vsel %vm1853_vm12, %v1535_v55, %v1864_v7  ;;  %v1549_v2 = vmax.f32 %v1547_v40, %v1548_v6  ;;  %2661 = vmatprep.subr.bf16.mxu0 %v2748_v32  ;;  %v2665_v18 = vpack.c.bf16 %v1885_v48, %v1884_v28  ;;  %v1896_v40 = vld [vmem:[%s4305_s6 + $0x90] sm:$0xff]  ;;  %v1897_v53 = vld [vmem:[%s4305_s6 + $0x98] sm:$0xff]  ;;  %v1910_v19 = vld [vmem:[%s4305_s6 + $0x100] sm:$0xff] }
 0x2f2   :  { %v1542_v44 = vmax.f32 %v1540_v29, %v1541_v11  ;;  %v1554_v3 = vmax.f32 %v1552_v1, %v1553_v21  ;;  %v2680_v0 = vpack.c.bf16 %v1895_v61, %v1894_v25  ;;  %v2683_v45 = vpack.c.bf16 %v1897_v53, %v1896_v40  ;;  %v1898_v29 = vld [vmem:[%s4305_s6 + $0xa0] sm:$0xff]  ;;  %v1899_v1 = vld [vmem:[%s4305_s6 + $0xa8] sm:$0xff]  ;;  %v1900_v6 = vld [vmem:[%s4305_s6 + $0xb0] sm:$0xff] }
 0x2f3   :  { %v1562_v47 = vrot.slane %v1561_v16, 1  ;;  %v2686_v55 = vpack.c.bf16 %v1899_v1, %v1898_v29  ;;  %v1901_v43 = vld [vmem:[%s4305_s6 + $0xb8] sm:$0xff]  ;;  %v1747_v21 = vrot.slane %v3705_v33, %v3953_v22  ;;  %v1904_v28 = vld [vmem:[%s4305_s6 + $0xd0] sm:$0xff]  ;;  %v1914_v61 = vld [vmem:[%s4305_s6 + $0x120] sm:$0xff] }
 0x2f4   :  { %v1555_v60 = vrot.slane %v1554_v3, 1  ;;  %v1866_v51 = vsel %vm1855_vm4, %v1542_v44, %v1865_v20  ;;  %2663 = vmatpush1.bf16.msra.mxu0 %v2662_v38  ;;  %v2689_v11 = vpack.c.bf16 %v1901_v43, %v1900_v6  ;;  %v1903_v38 = vld [vmem:[%s4305_s6 + $0xc8] sm:$0xff]  ;;  %v1916_v53 = vld [vmem:[%s4305_s6 + $0x130] sm:$0xff]  ;;  %v1918_v1 = vld [vmem:[%s4305_s6 + $0x140] sm:$0xff] }
 0x2f5   :  { %v1867_v56 = vsel %vm1857_vm5, %v1549_v2, %v1866_v51  ;;  %v1563_v12 = vmax.f32 %v1561_v16, %v1562_v47  ;;  %2664 = vmatprep.subr.bf16.mxu0 %v2748_v32  ;;  %v1821_v7 = vadd.f32 %v4018_v57, %v1747_v21  ;;  %v1826_v2 = vadd.f32 %v4016_v49, %v1747_v21  ;;  %v1920_v43 = vld [vmem:[%s4305_s6 + $0x150] sm:$0xff] }
 0x2f6   :  { %v1556_v10 = vmax.f32 %v1554_v3, %v1555_v60 }
 0x2f7   :  { %v1829_v16 = vmax.f32 %v1821_v7, 0.0  ;;  %v1830_v47 = vmax.f32 %v1826_v2, 0.0  ;;  %v1922_v7 = vld [vmem:[%s4305_s6 + $0x160] sm:$0xff]  ;;  %v1925_v2 = vld [vmem:[%s4305_s6 + $0x178] sm:$0xff] }
 0x2f8   :  { %v1868_v46 = vsel %vm1859_vm6, %v1556_v10, %v1867_v56  ;;  %2666 = vmatpush1.bf16.msra.mxu0 %v2665_v18  ;;  %v1905_v18 = vld [vmem:[%s4305_s6 + $0xd8] sm:$0xff] }
 0x2f9   :  { %v1869_v27 = vsel %vm1861_vm7, %v1563_v12, %v1868_v46  ;;  %2667 = vmatprep.subr.bf16.mxu0 %v2748_v32  ;;  %v1831_v20 = vadd.f32 %v1829_v16, %v3742_v36  ;;  %v1832_v63 = vadd.f32 %v1830_v47, %v3739_v42  ;;  %v2695_v30 = vpack.c.bf16 %v1905_v18, %v1904_v28  ;;  %v1923_v16 = vld [vmem:[%s4305_s6 + $0x168] sm:$0xff] }
 0x2fa   :  { %1872 = vrot.lane.b32.xlu1 %v1869_v27, %s2746_s19  ;;  %v1902_v27 = vld [vmem:[%s4305_s6 + $0xc0] sm:$0xff] }
 0x2fb   :  { %v2692_v48 = vpack.c.bf16 %v1903_v38, %v1902_v27 }
 0x2fc   :  { %2669 = vmatpush1.bf16.msra.mxu0 %v2668_v34  ;;  %v1907_v34 = vld [vmem:[%s4305_s6 + $0xe8] sm:$0xff] }
 0x2fd   :  { %2670 = vmatprep.subr.bf16.mxu0 %v2748_v32  ;;  %2693 = vmatpush1.bf16.msra.mxu1 %v2692_v48  ;;  %v2698_v52 = vpack.c.bf16 %v1907_v34, %v1906_v37  ;;  %v2731_v37 = vpack.c.bf16 %v2154_v15, %v2153_v5  ;;  %v2155_v34 = vld [vmem:[%s4307_s8 + $0x20] sm:$0xff] }
 0x2fe   :  { %2694 = vmatprep.subr.bf16.mxu1 %v2748_v32 }
 0x300   :  { %2672 = vmatpush1.bf16.msra.mxu0 %v2671_v39  ;;  %v1909_v39 = vld [vmem:[%s4305_s6 + $0xf8] sm:$0xff] }
 0x301   :  { %2673 = vmatprep.subr.bf16.mxu0 %v2748_v32  ;;  %2696 = vmatpush1.bf16.msra.mxu1 %v2695_v30  ;;  %v2701_v41 = vpack.c.bf16 %v1909_v39, %v1908_v50  ;;  %v2727_v30 = vpack.c.bf16 %v2152_v26, %v2151_v54  ;;  %v2157_v39 = vld [vmem:[%s4307_s8 + $0x30] sm:$0xff] }
 0x302   :  { %2697 = vmatprep.subr.bf16.mxu1 %v2748_v32 }
 0x304   :  { %2675 = vmatpush1.bf16.msra.mxu0 %v2674_v4  ;;  %v1911_v4 = vld [vmem:[%s4305_s6 + $0x108] sm:$0xff] }
 0x305   :  { %2676 = vmatprep.subr.bf16.mxu0 %v2748_v32  ;;  %2699 = vmatpush1.bf16.msra.mxu1 %v2698_v52  ;;  %v2704_v9 = vpack.c.bf16 %v1911_v4, %v1910_v19  ;;  %v2156_v52 = vld [vmem:[%s4307_s8 + $0x28] sm:$0xff] }
 0x306   :  { %2700 = vmatprep.subr.bf16.mxu1 %v2748_v32  ;;  %v2735_v50 = vpack.c.bf16 %v2156_v52, %v2155_v34 }
 0x308   :  { %2678 = vmatpush1.bf16.msra.mxu0 %v2677_v8  ;;  %v1913_v8 = vld [vmem:[%s4305_s6 + $0x118] sm:$0xff] }
 0x309   :  { %2679 = vmatprep.subr.bf16.mxu0 %v2748_v32  ;;  %2702 = vmatpush1.bf16.msra.mxu1 %v2701_v41  ;;  %v2707_v25 = vpack.c.bf16 %v1913_v8, %v1912_v13  ;;  %v2158_v41 = vld [vmem:[%s4307_s8 + $0x38] sm:$0xff] }
 0x30a   :  { %2703 = vmatprep.subr.bf16.mxu1 %v2748_v32  ;;  %v2739_v19 = vpack.c.bf16 %v2158_v41, %v2157_v39 }
 0x30c   :  { %2681 = vmatpush1.bf16.msra.mxu0 %v2680_v0  ;;  %v1915_v0 = vld [vmem:[%s4305_s6 + $0x128] sm:$0xff] }
 0x30d   :  { %2682 = vmatprep.subr.bf16.mxu0 %v2748_v32  ;;  %2705 = vmatpush1.bf16.msra.mxu1 %v2704_v9  ;;  %v2710_v40 = vpack.c.bf16 %v1915_v0, %v1914_v61 }
 0x30e   :  { %2706 = vmatprep.subr.bf16.mxu1 %v2748_v32 }
 0x310   :  { %2684 = vmatpush1.bf16.msra.mxu0 %v2683_v45  ;;  %v1917_v45 = vld [vmem:[%s4305_s6 + $0x138] sm:$0xff] }
 0x311   :  { %2685 = vmatprep.subr.bf16.mxu0 %v2748_v32  ;;  %2708 = vmatpush1.bf16.msra.mxu1 %v2707_v25  ;;  %v2713_v29 = vpack.c.bf16 %v1917_v45, %v1916_v53 }
 0x312   :  { %2709 = vmatprep.subr.bf16.mxu1 %v2748_v32 }
 0x314   :  { %2687 = vmatpush1.bf16.msra.mxu0 %v2686_v55  ;;  %v1919_v55 = vld [vmem:[%s4305_s6 + $0x148] sm:$0xff] }
 0x315   :  { %2688 = vmatprep.subr.bf16.mxu0 %v2748_v32  ;;  %2711 = vmatpush1.bf16.msra.mxu1 %v2710_v40  ;;  %v2716_v6 = vpack.c.bf16 %v1919_v55, %v1918_v1 }
 0x316   :  { %2712 = vmatprep.subr.bf16.mxu1 %v2748_v32 }
 0x318   :  { %2690 = vmatpush1.bf16.msra.mxu0 %v2689_v11  ;;  %v1921_v11 = vld [vmem:[%s4305_s6 + $0x158] sm:$0xff] }
 0x319   :  { %2714 = vmatpush1.bf16.msra.mxu1 %v2713_v29  ;;  %v2719_v21 = vpack.c.bf16 %v1921_v11, %v1920_v43  ;;  %2728 = vmatprep.subr.bf16.mxu0 %v2727_v30 }
 0x31a   :  { %2715 = vmatprep.subr.bf16.mxu1 %v2748_v32 }
 0x31d   :  { %2717 = vmatpush1.bf16.msra.mxu1 %v2716_v6 }
 0x31e   :  { %2718 = vmatprep.subr.bf16.mxu1 %v2748_v32 }
 0x321   :  { %2720 = vmatpush1.bf16.msra.mxu1 %v2719_v21 }
 0x322   :  { %2721 = vmatprep.subr.bf16.mxu1 %v2748_v32 }
 0x354   :  { %v1871_v44 = vpop.permute.xlu0 %1870 }
 0x355   :  { %v4117_v3 = vsel %vm703_vm13, %v1831_v20, %v1871_v44  ;;  %v2722_v20 = vpack.c.bf16 %v1923_v16, %v1922_v7  ;;  %v1924_v44 = vld [vmem:[%s4305_s6 + $0x170] sm:$0xff] }
 0x356   :  { %1941 = vrot.lane.b32.xlu0 %v4117_v3, %s2747_s26  ;;  %v1933_v57 = vrot.slane %v4117_v3, 1  ;;  %v1927_v51 = vrot.slane %v4117_v3, 7  ;;  %v2725_v47 = vpack.c.bf16 %v1925_v2, %v1924_v44 }
 0x357   :  { %2723 = vmatpush1.bf16.msra.mxu1 %v2722_v20 }
 0x358   :  { %2724 = vmatprep.subr.bf16.mxu1 %v2748_v32 }
 0x35b   :  { %2726 = vmatpush1.bf16.msra.mxu1 %v2725_v47 }
 0x36c   :  { %v1873_v31 = vpop.permute.xlu1 %1872 }
 0x36d   :  { %v4124_v33 = vsel %vm703_vm13, %v1832_v63, %v1873_v31  ;;  %v1926_v63 = vld [vmem:[%s4306_s7] sm:$0x3] }
 0x36e   :  { %v1934_v36 = vrot.slane %v4124_v33, 1  ;;  %1943 = vrot.lane.b32.xlu1 %v4124_v33, %s2747_s26  ;;  %v1928_v60 = vrot.slane %v4124_v33, 7  ;;  %v1952_v31 = vrot.slane %v1926_v63, %v3504_v24  ;;  %v2063_v4 = vrot.slane %v1926_v63, %v3953_v22  ;;  %v2293_v22 = vld [vmem:[%s4308_s9] ss:$0 sm:$0xff] }
 0x370   :  { %v1935_v62 = vsel %vm510_vm0, %v1933_v57, %v1934_v36  ;;  %v1936_v49 = vsel %vm510_vm0, %v1934_v36, %v1933_v57  ;;  %v1930_v59 = vsel %vm429_vm14, %v1928_v60, %v1927_v51  ;;  %v1929_v12 = vsel %vm429_vm14, %v1927_v51, %v1928_v60 }
 0x371   :  { %v1937_v42 = vsel %vm356_vm1, %v1935_v62, 0.0  ;;  %v1931_v56 = vsel %vm276_vm15, %v1930_v59, 0.0  ;;  %v1938_v23 = vsel %vm357_vm3, %v1936_v49, 0.0  ;;  %v1932_v58 = vsel %vm277_vm11, %v1929_v12, 0.0 }
 0x372   :  { %2289 = vmatprep.mubr.msk.f32.mxu0 %vm720_vm10, %v1937_v42 }
 0x3c8   :  { %v1942_v17 = vpop.permute.xlu0 %1941 }
 0x3c9   :  { %v1947_v10 = vsel %vm720_vm10, %v1931_v56, %v1942_v17 }
 0x3ca   :  { %2024 = vmatmul.mubr.f32.vlgmr.msra.gmra.mrb[18].mxu0 %v1947_v10 }
 0x3cb   :  { %2290 = vmatprep.mubr.msk.f32.mxu0 %vm720_vm10, %v1938_v23  ;;  %2730 = vmatpush3.bf16.msra.mxu0 %v2727_v30 }
 0x3cc   :  { %2732 = vmatprep.subr.bf16.mxu0 %v2731_v37 }
 0x3cf   :  { %2734 = vmatpush3.bf16.msra.mxu0 %v2731_v37 }
 0x3d0   :  { %2736 = vmatprep.subr.bf16.mxu0 %v2735_v50 }
 0x3d3   :  { %2738 = vmatpush3.bf16.msra.mxu0 %v2735_v50 }
 0x3d4   :  { %2740 = vmatprep.subr.bf16.mxu0 %v2739_v19 }
 0x3d7   :  { %2742 = vmatpush3.bf16.msra.mxu0 %v2739_v19 }
 0x3e0   :  { %v1944_v35 = vpop.permute.xlu1 %1943 }
 0x3e1   :  { %v1948_v46 = vsel %vm720_vm10, %v1932_v58, %v1944_v35 }
 0x3e2   :  { %2029 = vmatmul.mubr.f32.gmra.mrb[20].mxu0 %v1948_v46 }
 0x49d   :  { %v2025_v57 = vpop.f32.mrb[18].mxu0 }
 0x49e   :  { %v2026_v36 = vadd.f32 %v2025_v57, %v1952_v31  ;;  %v2027_v62 = vpop.f32.mrb[19].mxu0 }
 0x4a0   :  { %v2034_v49 = vmax.f32 %v2026_v36, 0.0 }
 0x4a2   :  { %v2036_v42 = vadd.f32 %v2034_v49, %v4117_v3 }
 0x4a4   :  { %2052 = vrot.lane.b32.xlu0 %v2036_v42, %s2747_s26  ;;  %v2044_v56 = vrot.slane %v2036_v42, 1  ;;  %v2038_v35 = vrot.slane %v2036_v42, 7 }
 0x4b5   :  { %v2030_v60 = vpop.f32.mrb[20].mxu0 }
 0x4b6   :  { %v2031_v51 = vadd.f32 %v2030_v60, %v1952_v31  ;;  %v2032_v59 = vpop.f32.mrb[21].mxu0 }
 0x4b8   :  { %v2035_v17 = vmax.f32 %v2031_v51, 0.0 }
 0x4ba   :  { %v2037_v32 = vadd.f32 %v2035_v17, %v4124_v33 }
 0x4bc   :  { %2054 = vrot.lane.b32.xlu1 %v2037_v32, %s2747_s26  ;;  %v2045_v10 = vrot.slane %v2037_v32, 1  ;;  %v2039_v12 = vrot.slane %v2037_v32, 7 }
 0x4be   :  { %v2046_v24 = vsel %vm510_vm0, %v2044_v56, %v2045_v10  ;;  %v2047_v23 = vsel %vm510_vm0, %v2045_v10, %v2044_v56  ;;  %v2041_v33 = vsel %vm429_vm14, %v2039_v12, %v2038_v35  ;;  %v2040_v14 = vsel %vm429_vm14, %v2038_v35, %v2039_v12 }
 0x4bf   :  { %v2048_v3 = vsel %vm356_vm1, %v2046_v24, 0.0  ;;  %v2042_v46 = vsel %vm276_vm15, %v2041_v33, 0.0  ;;  %v2049_v38 = vsel %vm357_vm3, %v2047_v23, 0.0  ;;  %v2043_v48 = vsel %vm277_vm11, %v2040_v14, 0.0 }
 0x4c0   :  { %2291 = vmatprep.mubr.msk.f32.mxu1 %vm720_vm10, %v2048_v3 }
 0x516   :  { %v2053_v58 = vpop.permute.xlu0 %2052 }
 0x517   :  { %v2058_v27 = vsel %vm720_vm10, %v2042_v46, %v2053_v58 }
 0x518   :  { %2135 = vmatmul.mubr.f32.vlgmr.msra.gmra.mrb[18].mxu1 %v2058_v27 }
 0x519   :  { %2292 = vmatprep.mubr.msk.f32.mxu1 %vm720_vm10, %v2049_v38 }
 0x52e   :  { %v2055_v28 = vpop.permute.xlu1 %2054 }
 0x52f   :  { %v2059_v18 = vsel %vm720_vm10, %v2043_v48, %v2055_v28 }
 0x530   :  { %2140 = vmatmul.mubr.f32.gmra.mrb[20].mxu1 %v2059_v18 }
 0x5eb   :  { %v2136_v9 = vpop.f32.mrb[18].mxu1 }
 0x5ec   :  { %v2137_v13 = vadd.f32 %v2136_v9, %v2063_v4  ;;  %v2138_v8 = vpop.f32.mrb[19].mxu1 }
 0x5ee   :  { %v2145_v25 = vmax.f32 %v2137_v13, 0.0 }
 0x5f0   :  { %v2147_v61 = vadd.f32 %v2145_v25, %v2036_v42 }
 0x5f2   :  { %v2149_v0 = vmax.f32 %v2147_v61, 0.0 }
 0x5f4   :  { %2556 = vmatprep.mubr.msk.f32.mxu0 %vm720_vm10, %v2149_v0 }
 0x603   :  { %v2141_v40 = vpop.f32.mrb[20].mxu1 }
 0x604   :  { %v2142_v53 = vadd.f32 %v2141_v40, %v2063_v4  ;;  %v2143_v45 = vpop.f32.mrb[21].mxu1 }
 0x606   :  { %v2146_v29 = vmax.f32 %v2142_v53, 0.0 }
 0x608   :  { %v2148_v1 = vadd.f32 %v2146_v29, %v2037_v32 }
 0x60a   :  { %v2150_v55 = vmax.f32 %v2148_v1, 0.0 }
 0x60c   :  { %2557 = vmatmul.mubr.msk.f32.vlgmr.msra.gmra.mrb[22].mxu0 %vm720_vm10, %v2150_v55 }
 0x6df   :  { %v2558_v6 = vpop.f32.mrb[22].mxu0 }
 0x6e0   :  { %v2244_v43 = vadd.f32 %v2558_v6, %v2293_v22  ;;  %v2238_v11 = vpop.f32.mrb[23].mxu0 }
 0x6e1   :  { %v2239_v21 = vadd.f32 %v2293_v22, %v2238_v11 }
 0x6e2   :  { %2248 = vst [vmem:[%s4309_s10 + $0x8] sm:$0xff] %v2244_v43 }
 0x6e3   :  { %2247 = vst [vmem:[%s4309_s10] sm:$0xff] %v2239_v21 }

</bundles_post_ra>
